<compile_context>
chip_gen: v5e
topology: v5e:2x2
jax: 0.10.0
libtpu: 0.0.40
codegen_flags: <defaults>
</compile_context>

<pallas_src>
import jax
import jax.numpy as jnp
from jax import lax
from jax.experimental import pallas as pl
from jax.experimental.pallas import tpu as pltpu


def _make_s2_kernel(*, nodes_per_matmul, num_chunks, channels, matmul_dtype):
    NB = nodes_per_matmul
    C = channels

    def kernel(x_ref, tg_ref, fgt_ref, o_ref):
        # x_ref  : (block_z, I, C)  tile of node embeddings (f32)
        # tg_ref : (G, I)  to-grid matrix, matmul_dtype, VMEM resident
        # fgt_ref: (I, G)  from-grid matrix (pre-transposed), VMEM resident
        # o_ref  : (block_z, I, C)
        T = tg_ref[...]
        Ft = fgt_ref[...]

        def chunk(cc, carry):
            base = cc * NB
            # Lane-concatenate NB nodes into one (I, NB*C) operand: the node
            # dimension becomes matmul-N, so the MXU streams NB*C columns per
            # weight load instead of NB separate K=9 matmuls.
            xi = jnp.concatenate(
                [x_ref[base + j].astype(matmul_dtype) for j in range(NB)],
                axis=1)                                               # (I, NB*C)
            xg = jnp.dot(T, xi, preferred_element_type=jnp.float32)   # (G, NB*C) MXU
            a = xg * jax.nn.sigmoid(xg)                               # SiLU in f32
            out = jnp.dot(Ft, a.astype(matmul_dtype),
                          preferred_element_type=jnp.float32)         # (I, NB*C) MXU
            for j in range(NB):                                       # lane-dense stores
                o_ref[base + j] = out[:, j * C:(j + 1) * C].astype(o_ref.dtype)
            return carry

        # Rolled loop: each iteration already holds a (G, NB*C) f32
        # intermediate (~36+ vregs); unrolling further would force spills.
        lax.fori_loop(0, num_chunks, chunk, 0)

    return kernel


def s2_activation(inputs, to_grid_mat, from_grid_mat, *, block_z=256,
                  nodes_per_matmul=8, matmul_dtype=jnp.bfloat16):
    """
    inputs:        (Z, I, C) float32
    to_grid_mat:   (res_beta, res_alpha, I) float32
    from_grid_mat: (res_beta, res_alpha, I) float32
    returns:       (Z, I, C) float32
    """
    Z, I, C = inputs.shape
    rb, ra, I_t = to_grid_mat.shape
    assert I_t == I and from_grid_mat.shape == (rb, ra, I)
    G = rb * ra

    # Tiny one-time reshape/transpose + bf16 cast of the grid matrices.
    T = to_grid_mat.reshape(G, I).astype(matmul_dtype)        # (G, I)
    Ft = from_grid_mat.reshape(G, I).T.astype(matmul_dtype)   # (I, G)

    # Nodes folded into each matmul's N dimension, and the Z tile size.
    NB = max(1, min(nodes_per_matmul, Z))
    block_z = max(NB, (min(block_z, Z) // NB) * NB)           # multiple of NB, <= Z
    num_chunks = block_z // NB
    n_blocks = pl.cdiv(Z, block_z)   # ragged last tile handled by Pallas masking

    kernel = _make_s2_kernel(nodes_per_matmul=NB, num_chunks=num_chunks,
                             channels=C, matmul_dtype=matmul_dtype)

    return pl.pallas_call(
        kernel,
        out_shape=jax.ShapeDtypeStruct((Z, I, C), inputs.dtype),
        grid=(n_blocks,),
        in_specs=[
            pl.BlockSpec((block_z, I, C), lambda z: (z, 0, 0)),   # node tile
            pl.BlockSpec((G, I), lambda z: (0, 0)),               # to-grid (resident)
            pl.BlockSpec((I, G), lambda z: (0, 0)),               # from-grid^T (resident)
        ],
        out_specs=pl.BlockSpec((block_z, I, C), lambda z: (z, 0, 0)),
        compiler_params=pltpu.CompilerParams(
            dimension_semantics=("parallel",),   # shards Z tiles across TCs on v7x
        ),
    )(inputs, T, Ft)


if __name__ == "__main__":
    # Shapes consistent with the module: lmax=2 -> 9 SH coefficients,
    # a 6x12 sphere grid (G = 72 points), 128 channels (lane-dense), 64 nodes.
    lmax = 2
    I = (lmax + 1) ** 2            # 9
    res_beta, res_alpha = 6, 12    # G = 72
    C = 128
    Z = 64

    key = jax.random.PRNGKey(0)
    k_x, k_t, k_f = jax.random.split(key, 3)

    inputs = jax.random.normal(k_x, (Z, I, C), dtype=jnp.float32)
    to_grid_mat = (jax.random.normal(k_t, (res_beta, res_alpha, I), dtype=jnp.float32)
                   / jnp.sqrt(float(I)))
    from_grid_mat = (jax.random.normal(k_f, (res_beta, res_alpha, I), dtype=jnp.float32)
                     / jnp.sqrt(float(res_beta * res_alpha)))

    out = s2_activation(inputs, to_grid_mat, from_grid_mat, block_z=32)
    out = jax.block_until_ready(out)
    assert out.shape == (Z, I, C)

    # Reference 1: exact f32 forward of the PyTorch module.
    x_grid = jnp.einsum('bai,zic->zbac', to_grid_mat, inputs, precision='highest')
    x_grid = x_grid * jax.nn.sigmoid(x_grid)
    ref_f32 = jnp.einsum('bai,zbac->zic', from_grid_mat, x_grid, precision='highest')

    # Reference 2: same bf16-operand / f32-accumulate recipe the kernel uses.
    G = res_beta * res_alpha
    tb = to_grid_mat.reshape(G, I).astype(jnp.bfloat16)
    fb = from_grid_mat.reshape(G, I).astype(jnp.bfloat16)
    xg = jnp.einsum('gi,zic->zgc', tb, inputs.astype(jnp.bfloat16),
                    preferred_element_type=jnp.float32)
    ag = xg * jax.nn.sigmoid(xg)
    ref_bf16 = jnp.einsum('gi,zgc->zic', fb, ag.astype(jnp.bfloat16),
                          preferred_element_type=jnp.float32)

    err_vs_bf16 = float(jnp.max(jnp.abs(out - ref_bf16)))
    err_vs_f32 = float(jnp.max(jnp.abs(out - ref_f32)) /
                       (jnp.max(jnp.abs(ref_f32)) + 1e-6))
    assert err_vs_bf16 < 1e-2, f"mismatch vs bf16-matched reference: {err_vs_bf16}"
    assert err_vs_f32 < 0.1, f"mismatch vs f32 reference (rel): {err_vs_f32}"

    print("KERNEL_OK")
</pallas_src>

<mosaic_0001>
module attributes {stable_mosaic.version = 11 : i64} {
  func.func @kernel(%arg0: i32, %arg1: memref<32x9x128xf32, #tpu.memory_space<vmem>>, %arg2: memref<72x9xbf16, #tpu.memory_space<vmem>>, %arg3: memref<9x72xbf16, #tpu.memory_space<vmem>>, %arg4: memref<32x9x128xf32, #tpu.memory_space<vmem>>) attributes {dimension_semantics = [#tpu.dimension_semantics<parallel>], iteration_bounds = array<i64: 2>, scalar_prefetch = 0 : i64, scratch_operands = 0 : i64, tpu.core_type = #tpu.core_type<tc>, window_params = [{transform_indices = @transform_0, window_bounds = array<i64: 32, 9, 128>}, {pipeline_mode = #tpu.pipeline_mode<synchronous>, transform_indices = @transform_1, window_bounds = array<i64: 72, 9>}, {pipeline_mode = #tpu.pipeline_mode<synchronous>, transform_indices = @transform_2, window_bounds = array<i64: 9, 72>}, {transform_indices = @transform_3, window_bounds = array<i64: 32, 9, 128>}]} {
    %c0 = arith.constant 0 : index
    %c0_0 = arith.constant 0 : index
    %0 = vector.load %arg2[%c0, %c0_0] : memref<72x9xbf16, #tpu.memory_space<vmem>>, vector<72x9xbf16>
    %c0_1 = arith.constant 0 : index
    %c0_2 = arith.constant 0 : index
    %1 = vector.load %arg3[%c0_1, %c0_2] : memref<9x72xbf16, #tpu.memory_space<vmem>>, vector<9x72xbf16>
    %c0_i32 = arith.constant 0 : i32
    %c4_i32 = arith.constant 4 : i32
    %2 = arith.addi %c0_i32, %c4_i32 : i32
    %c1_i32 = arith.constant 1 : i32
    scf.for %arg5 = %c0_i32 to %2 step %c1_i32  : i32 {
      %c8_i32 = arith.constant 8 : i32
      %3 = arith.muli %arg5, %c8_i32 : i32
      %c0_i32_4 = arith.constant 0 : i32
      %4 = arith.addi %3, %c0_i32_4 : i32
      %5 = arith.index_cast %4 : i32 to index
      %c0_5 = arith.constant 0 : index
      %c0_6 = arith.constant 0 : index
      %6 = vector.load %arg1[%5, %c0_5, %c0_6] : memref<32x9x128xf32, #tpu.memory_space<vmem>>, vector<1x9x128xf32>
      %7 = vector.shape_cast %6 : vector<1x9x128xf32> to vector<9x128xf32>
      %8 = arith.truncf %7 : vector<9x128xf32> to vector<9x128xbf16>
      %c1_i32_7 = arith.constant 1 : i32
      %9 = arith.addi %3, %c1_i32_7 : i32
      %10 = arith.index_cast %9 : i32 to index
      %c0_8 = arith.constant 0 : index
      %c0_9 = arith.constant 0 : index
      %11 = vector.load %arg1[%10, %c0_8, %c0_9] : memref<32x9x128xf32, #tpu.memory_space<vmem>>, vector<1x9x128xf32>
      %12 = vector.shape_cast %11 : vector<1x9x128xf32> to vector<9x128xf32>
      %13 = arith.truncf %12 : vector<9x128xf32> to vector<9x128xbf16>
      %c2_i32 = arith.constant 2 : i32
      %14 = arith.addi %3, %c2_i32 : i32
      %15 = arith.index_cast %14 : i32 to index
      %c0_10 = arith.constant 0 : index
      %c0_11 = arith.constant 0 : index
      %16 = vector.load %arg1[%15, %c0_10, %c0_11] : memref<32x9x128xf32, #tpu.memory_space<vmem>>, vector<1x9x128xf32>
      %17 = vector.shape_cast %16 : vector<1x9x128xf32> to vector<9x128xf32>
      %18 = arith.truncf %17 : vector<9x128xf32> to vector<9x128xbf16>
      %c3_i32 = arith.constant 3 : i32
      %19 = arith.addi %3, %c3_i32 : i32
      %20 = arith.index_cast %19 : i32 to index
      %c0_12 = arith.constant 0 : index
      %c0_13 = arith.constant 0 : index
      %21 = vector.load %arg1[%20, %c0_12, %c0_13] : memref<32x9x128xf32, #tpu.memory_space<vmem>>, vector<1x9x128xf32>
      %22 = vector.shape_cast %21 : vector<1x9x128xf32> to vector<9x128xf32>
      %23 = arith.truncf %22 : vector<9x128xf32> to vector<9x128xbf16>
      %c4_i32_14 = arith.constant 4 : i32
      %24 = arith.addi %3, %c4_i32_14 : i32
      %25 = arith.index_cast %24 : i32 to index
      %c0_15 = arith.constant 0 : index
      %c0_16 = arith.constant 0 : index
      %26 = vector.load %arg1[%25, %c0_15, %c0_16] : memref<32x9x128xf32, #tpu.memory_space<vmem>>, vector<1x9x128xf32>
      %27 = vector.shape_cast %26 : vector<1x9x128xf32> to vector<9x128xf32>
      %28 = arith.truncf %27 : vector<9x128xf32> to vector<9x128xbf16>
      %c5_i32 = arith.constant 5 : i32
      %29 = arith.addi %3, %c5_i32 : i32
      %30 = arith.index_cast %29 : i32 to index
      %c0_17 = arith.constant 0 : index
      %c0_18 = arith.constant 0 : index
      %31 = vector.load %arg1[%30, %c0_17, %c0_18] : memref<32x9x128xf32, #tpu.memory_space<vmem>>, vector<1x9x128xf32>
      %32 = vector.shape_cast %31 : vector<1x9x128xf32> to vector<9x128xf32>
      %33 = arith.truncf %32 : vector<9x128xf32> to vector<9x128xbf16>
      %c6_i32 = arith.constant 6 : i32
      %34 = arith.addi %3, %c6_i32 : i32
      %35 = arith.index_cast %34 : i32 to index
      %c0_19 = arith.constant 0 : index
      %c0_20 = arith.constant 0 : index
      %36 = vector.load %arg1[%35, %c0_19, %c0_20] : memref<32x9x128xf32, #tpu.memory_space<vmem>>, vector<1x9x128xf32>
      %37 = vector.shape_cast %36 : vector<1x9x128xf32> to vector<9x128xf32>
      %38 = arith.truncf %37 : vector<9x128xf32> to vector<9x128xbf16>
      %c7_i32 = arith.constant 7 : i32
      %39 = arith.addi %3, %c7_i32 : i32
      %40 = arith.index_cast %39 : i32 to index
      %c0_21 = arith.constant 0 : index
      %c0_22 = arith.constant 0 : index
      %41 = vector.load %arg1[%40, %c0_21, %c0_22] : memref<32x9x128xf32, #tpu.memory_space<vmem>>, vector<1x9x128xf32>
      %42 = vector.shape_cast %41 : vector<1x9x128xf32> to vector<9x128xf32>
      %43 = arith.truncf %42 : vector<9x128xf32> to vector<9x128xbf16>
      %44 = tpu.concatenate %8, %13, %18, %23, %28, %33, %38, %43 in 1 : vector<9x128xbf16>, vector<9x128xbf16>, vector<9x128xbf16>, vector<9x128xbf16>, vector<9x128xbf16>, vector<9x128xbf16>, vector<9x128xbf16>, vector<9x128xbf16> -> vector<9x1024xbf16>
      %cst = arith.constant dense<0.000000e+00> : vector<72x1024xf32>
      %45 = tpu.matmul %0, %44, %cst {dimension_numbers = #tpu.dot_dimension_numbers<[1], [0], [0], [1], [0, 0, 1, 1], [], []>} : vector<72x9xbf16>, vector<9x1024xbf16>, vector<72x1024xf32> -> vector<72x1024xf32>
      %46 = arith.negf %45 : vector<72x1024xf32>
      %47 = math.exp %46 : vector<72x1024xf32>
      %cst_23 = arith.constant 1.000000e+00 : f32
      %48 = vector.broadcast %cst_23 : f32 to vector<72x1024xf32>
      %49 = arith.addf %48, %47 : vector<72x1024xf32>
      %50 = arith.divf %48, %49 : vector<72x1024xf32>
      %51 = arith.mulf %45, %50 : vector<72x1024xf32>
      %52 = arith.truncf %51 : vector<72x1024xf32> to vector<72x1024xbf16>
      %cst_24 = arith.constant dense<0.000000e+00> : vector<9x1024xf32>
      %53 = tpu.matmul %1, %52, %cst_24 {dimension_numbers = #tpu.dot_dimension_numbers<[1], [0], [0], [1], [0, 0, 1, 1], [], []>} : vector<9x72xbf16>, vector<72x1024xbf16>, vector<9x1024xf32> -> vector<9x1024xf32>
      %54 = vector.extract_strided_slice %53 {offsets = [0, 0], sizes = [9, 128], strides = [1, 1]} : vector<9x1024xf32> to vector<9x128xf32>
      %c0_i32_25 = arith.constant 0 : i32
      %55 = arith.addi %3, %c0_i32_25 : i32
      %56 = arith.index_cast %55 : i32 to index
      %c0_26 = arith.constant 0 : index
      %c0_27 = arith.constant 0 : index
      %57 = vector.load %arg4[%56, %c0_26, %c0_27] : memref<32x9x128xf32, #tpu.memory_space<vmem>>, vector<1x9x128xf32>
      %58 = vector.shape_cast %57 : vector<1x9x128xf32> to vector<9x128xf32>
      %59 = vector.shape_cast %54 : vector<9x128xf32> to vector<1x9x128xf32>
      tpu.vector_store %arg4[%56, %c0_26, %c0_27], %59 {strides = array<i32>} : memref<32x9x128xf32, #tpu.memory_space<vmem>>, vector<1x9x128xf32>,
      %60 = vector.extract_strided_slice %53 {offsets = [0, 128], sizes = [9, 128], strides = [1, 1]} : vector<9x1024xf32> to vector<9x128xf32>
      %c1_i32_28 = arith.constant 1 : i32
      %61 = arith.addi %3, %c1_i32_28 : i32
      %62 = arith.index_cast %61 : i32 to index
      %c0_29 = arith.constant 0 : index
      %c0_30 = arith.constant 0 : index
      %63 = vector.load %arg4[%62, %c0_29, %c0_30] : memref<32x9x128xf32, #tpu.memory_space<vmem>>, vector<1x9x128xf32>
      %64 = vector.shape_cast %63 : vector<1x9x128xf32> to vector<9x128xf32>
      %65 = vector.shape_cast %60 : vector<9x128xf32> to vector<1x9x128xf32>
      tpu.vector_store %arg4[%62, %c0_29, %c0_30], %65 {strides = array<i32>} : memref<32x9x128xf32, #tpu.memory_space<vmem>>, vector<1x9x128xf32>,
      %66 = vector.extract_strided_slice %53 {offsets = [0, 256], sizes = [9, 128], strides = [1, 1]} : vector<9x1024xf32> to vector<9x128xf32>
      %c2_i32_31 = arith.constant 2 : i32
      %67 = arith.addi %3, %c2_i32_31 : i32
      %68 = arith.index_cast %67 : i32 to index
      %c0_32 = arith.constant 0 : index
      %c0_33 = arith.constant 0 : index
      %69 = vector.load %arg4[%68, %c0_32, %c0_33] : memref<32x9x128xf32, #tpu.memory_space<vmem>>, vector<1x9x128xf32>
      %70 = vector.shape_cast %69 : vector<1x9x128xf32> to vector<9x128xf32>
      %71 = vector.shape_cast %66 : vector<9x128xf32> to vector<1x9x128xf32>
      tpu.vector_store %arg4[%68, %c0_32, %c0_33], %71 {strides = array<i32>} : memref<32x9x128xf32, #tpu.memory_space<vmem>>, vector<1x9x128xf32>,
      %72 = vector.extract_strided_slice %53 {offsets = [0, 384], sizes = [9, 128], strides = [1, 1]} : vector<9x1024xf32> to vector<9x128xf32>
      %c3_i32_34 = arith.constant 3 : i32
      %73 = arith.addi %3, %c3_i32_34 : i32
      %74 = arith.index_cast %73 : i32 to index
      %c0_35 = arith.constant 0 : index
      %c0_36 = arith.constant 0 : index
      %75 = vector.load %arg4[%74, %c0_35, %c0_36] : memref<32x9x128xf32, #tpu.memory_space<vmem>>, vector<1x9x128xf32>
      %76 = vector.shape_cast %75 : vector<1x9x128xf32> to vector<9x128xf32>
      %77 = vector.shape_cast %72 : vector<9x128xf32> to vector<1x9x128xf32>
      tpu.vector_store %arg4[%74, %c0_35, %c0_36], %77 {strides = array<i32>} : memref<32x9x128xf32, #tpu.memory_space<vmem>>, vector<1x9x128xf32>,
      %78 = vector.extract_strided_slice %53 {offsets = [0, 512], sizes = [9, 128], strides = [1, 1]} : vector<9x1024xf32> to vector<9x128xf32>
      %c4_i32_37 = arith.constant 4 : i32
      %79 = arith.addi %3, %c4_i32_37 : i32
      %80 = arith.index_cast %79 : i32 to index
      %c0_38 = arith.constant 0 : index
      %c0_39 = arith.constant 0 : index
      %81 = vector.load %arg4[%80, %c0_38, %c0_39] : memref<32x9x128xf32, #tpu.memory_space<vmem>>, vector<1x9x128xf32>
      %82 = vector.shape_cast %81 : vector<1x9x128xf32> to vector<9x128xf32>
      %83 = vector.shape_cast %78 : vector<9x128xf32> to vector<1x9x128xf32>
      tpu.vector_store %arg4[%80, %c0_38, %c0_39], %83 {strides = array<i32>} : memref<32x9x128xf32, #tpu.memory_space<vmem>>, vector<1x9x128xf32>,
      %84 = vector.extract_strided_slice %53 {offsets = [0, 640], sizes = [9, 128], strides = [1, 1]} : vector<9x1024xf32> to vector<9x128xf32>
      %c5_i32_40 = arith.constant 5 : i32
      %85 = arith.addi %3, %c5_i32_40 : i32
      %86 = arith.index_cast %85 : i32 to index
      %c0_41 = arith.constant 0 : index
      %c0_42 = arith.constant 0 : index
      %87 = vector.load %arg4[%86, %c0_41, %c0_42] : memref<32x9x128xf32, #tpu.memory_space<vmem>>, vector<1x9x128xf32>
      %88 = vector.shape_cast %87 : vector<1x9x128xf32> to vector<9x128xf32>
      %89 = vector.shape_cast %84 : vector<9x128xf32> to vector<1x9x128xf32>
      tpu.vector_store %arg4[%86, %c0_41, %c0_42], %89 {strides = array<i32>} : memref<32x9x128xf32, #tpu.memory_space<vmem>>, vector<1x9x128xf32>,
      %90 = vector.extract_strided_slice %53 {offsets = [0, 768], sizes = [9, 128], strides = [1, 1]} : vector<9x1024xf32> to vector<9x128xf32>
      %c6_i32_43 = arith.constant 6 : i32
      %91 = arith.addi %3, %c6_i32_43 : i32
      %92 = arith.index_cast %91 : i32 to index
      %c0_44 = arith.constant 0 : index
      %c0_45 = arith.constant 0 : index
      %93 = vector.load %arg4[%92, %c0_44, %c0_45] : memref<32x9x128xf32, #tpu.memory_space<vmem>>, vector<1x9x128xf32>
      %94 = vector.shape_cast %93 : vector<1x9x128xf32> to vector<9x128xf32>
      %95 = vector.shape_cast %90 : vector<9x128xf32> to vector<1x9x128xf32>
      tpu.vector_store %arg4[%92, %c0_44, %c0_45], %95 {strides = array<i32>} : memref<32x9x128xf32, #tpu.memory_space<vmem>>, vector<1x9x128xf32>,
      %96 = vector.extract_strided_slice %53 {offsets = [0, 896], sizes = [9, 128], strides = [1, 1]} : vector<9x1024xf32> to vector<9x128xf32>
      %c7_i32_46 = arith.constant 7 : i32
      %97 = arith.addi %3, %c7_i32_46 : i32
      %98 = arith.index_cast %97 : i32 to index
      %c0_47 = arith.constant 0 : index
      %c0_48 = arith.constant 0 : index
      %99 = vector.load %arg4[%98, %c0_47, %c0_48] : memref<32x9x128xf32, #tpu.memory_space<vmem>>, vector<1x9x128xf32>
      %100 = vector.shape_cast %99 : vector<1x9x128xf32> to vector<9x128xf32>
      %101 = vector.shape_cast %96 : vector<9x128xf32> to vector<1x9x128xf32>
      tpu.vector_store %arg4[%98, %c0_47, %c0_48], %101 {strides = array<i32>} : memref<32x9x128xf32, #tpu.memory_space<vmem>>, vector<1x9x128xf32>,
    }
    %c4_i32_3 = arith.constant 4 : i32
    return
  }
  func.func @transform_0(%arg0: i32) -> (i32, i32, i32) {
    %c0_i32 = arith.constant 0 : i32
    %c0_i32_0 = arith.constant 0 : i32
    %c0_i32_1 = arith.constant 0 : i32
    return %arg0, %c0_i32, %c0_i32_0 : i32, i32, i32
  }
  func.func @transform_1(%arg0: i32) -> (i32, i32) {
    %c0_i32 = arith.constant 0 : i32
    %c0_i32_0 = arith.constant 0 : i32
    %c0_i32_1 = arith.constant 0 : i32
    return %c0_i32, %c0_i32_0 : i32, i32
  }
  func.func @transform_2(%arg0: i32) -> (i32, i32) {
    %c0_i32 = arith.constant 0 : i32
    %c0_i32_0 = arith.constant 0 : i32
    %c0_i32_1 = arith.constant 0 : i32
    return %c0_i32, %c0_i32_0 : i32, i32
  }
  func.func @transform_3(%arg0: i32) -> (i32, i32, i32) {
    %c0_i32 = arith.constant 0 : i32
    %c0_i32_0 = arith.constant 0 : i32
    %c0_i32_1 = arith.constant 0 : i32
    return %arg0, %c0_i32, %c0_i32_0 : i32, i32, i32
  }
}

</mosaic_0001>

<bundles_post_ra>
// kernel: tpu_custom_call.1
= control target key start
LH: loop header
LB: loop body
LE: loop exit
PB: predicated region body
PF: predicated region fallthrough
CT: control target
= control target key end

     0   :  { %s2971_s12 = smov 0   ;;  %s5294_s0 = inlined_call_operand.vmem [shape: f32[64,9,128], index: 0, kind: input, shape index: {}]   ;;  %s5295_s1 = inlined_call_operand.vmem [shape: bf16[72,9], index: 1, kind: input, shape index: {}]   ;;  %s5296_s2 = inlined_call_operand.vmem [shape: bf16[9,72], index: 2, kind: input, shape index: {}]   ;;  %s5297_s3 = inlined_call_operand.vmem [shape: f32[64,9,128], index: 3, kind: output, shape index: {}]  }
   0x1 LB: > { %s2396_s13 = sadd.s32 4294967295, %s2944_s12   ;;  %p2400_p0 = scmp.ge.s32.totalorder %s2944_s12, 1  ;;  %s2944_s12 = sphi %s2971_s12, %s13_s12  }
   0x2   : > { %p139_p1 = scmp.lt.s32.totalorder %s2944_s12, 3 }
   0x4   : > { %p140_p2 = pnand %p2400_p0, %p139_p1 }
   0x5   : > { %s2401_s14 = sshll.u32 (!%p140_p2), %s2396_s13, 5  ;;  %s3044_s19 = smov (!%p140_p2), 0  }
   0x6   : > { %143 = sbr.rel (%p140_p2) target bundleno = 656 (0x290), region = 32  ;;  %p166_p3 = scmp.lt.s32.totalorder (!%p140_p2), %s2401_s14, 63 }
   0xb   : > { %v2982_v0 = vld [vmem:[%s5295_s1] sm:$0xf]  ;;  %v2987_v1 = vld [vmem:[%s5295_s1] sm:$0xf0]  ;;  %v2992_v2 = vld [vmem:[%s5295_s1 + $0x8] sm:$0xf] }
   0xc   : > { %5312 = vst [vmem:[#allocation2_spill] sm:$0xff] %v2982_v0  ;;  %v2997_v3 = vld [vmem:[%s5295_s1 + $0x8] sm:$0xf0]  ;;  %v3002_v4 = vld [vmem:[%s5295_s1 + $0x10] sm:$0xf]  ;;  %s5570_s14 = smov (!%p166_p3, %s2401_s14), 63 }
   0xd   : > { %5313 = vst [vmem:[#allocation3_spill] sm:$0xff] %v2987_v1  ;;  %v3007_v5 = vld [vmem:[%s5295_s1 + $0x10] sm:$0xf0]  ;;  %v3012_v6 = vld [vmem:[%s5295_s1 + $0x18] sm:$0xf]  ;;  %s2607_s10 = sshll.u32 %s5570_s14, 4 }
   0xe   : > { %5314 = vst [vmem:[#allocation4_spill] sm:$0xff] %v2992_v2  ;;  %v3017_v7 = vld [vmem:[%s5295_s1 + $0x18] sm:$0xf0]  ;;  %v3022_v8 = vld [vmem:[%s5295_s1 + $0x20] sm:$0xf]  ;;  %s3037_s15 = scalar_lea.vmem %s5294_s0, %s2607_s10  ;;  %s3042_s18 = scalar_lea.vmem %s5297_s3, %s2607_s10 }
   0xf   : > { %5315 = vst [vmem:[#allocation5_spill] sm:$0xff] %v2997_v3  ;;  %v3027_v9 = vld [vmem:[%s5296_s2] sm:$0xf]  ;;  %v3032_v10 = vld [vmem:[%s5296_s2] sm:$0x10] }
  0x10   : > { %5316 = vst [vmem:[#allocation6_spill] sm:$0xff] %v3002_v4 }
  0x11   : > { %5317 = vst [vmem:[#allocation7_spill] sm:$0xff] %v3007_v5 }
  0x12   : > { %5318 = vst [vmem:[#allocation8_spill] sm:$0xff] %v3012_v6 }
  0x13   : > { %5319 = vst [vmem:[#allocation9_spill] sm:$0xff] %v3017_v7 }
  0x14   : > { %5320 = vst [vmem:[#allocation10_spill] sm:$0xff] %v3022_v8 }
  0x15   : > { %5321 = vst [vmem:[#allocation11_spill] sm:$0xff] %v3027_v9 }
  0x16   : > { %5322 = vst [vmem:[#allocation12_spill] sm:$0xff] %v3032_v10 }
  0x17 LB: >> { %vm332_vm0 = vcmask 1043456   ;;  %s2614_s14 = sshll.u32 %s2948_s19, 7  ;;  %vm333_vm1 = vcmask 1044480   ;;  %v2950_v11 = vmov 65535   ;;  %v5323_v0 = vld [vmem:[#allocation2_spill] sm:$0xff]  ;;  %v5324_v1 = vld [vmem:[#allocation3_spill] sm:$0xff]  ;;  %s2948_s19 = sphi %s3044_s19, %s196_s19  }
  0x18   : >> { %s3053_s20 = scalar_lea.vmem %s3037_s15, %s2614_s14  ;;  %v334_v12 = vsel %vm332_vm0, 4294967295, %v2950_v11  ;;  %v3061_v16 = vor.u32 %v5324_v1, %v5323_v0  ;;  %vm316_vm2 = vcmask 72704   ;;  %v5325_v2 = vld [vmem:[#allocation4_spill] sm:$0xff]  ;;  %v5326_v3 = vld [vmem:[#allocation5_spill] sm:$0xff]  ;;  %v5327_v4 = vld [vmem:[#allocation6_spill] sm:$0xff]  ;;  %s5270_s21 = scalar_lea.vmem %s3042_s18, %s2614_s14 }
  0x19   : >> { %v200_v13 = vld [vmem:[%s3053_s20] sm:$0xff]  ;;  %v201_v14 = vld [vmem:[%s3053_s20 + $0x8] sm:$0x1]  ;;  %v2411_v15 = vld [vmem:[%s3053_s20 + $0x10] sm:$0xff]  ;;  %v3066_v23 = vsel %vm333_vm1, %v334_v12, 0  ;;  %s196_s19 = sadd.s32 1, %s2948_s19  }
  0x1a   : >> { %v202_v17 = vpack.c.bf16 %v200_v13, %v200_v13  ;;  %v203_v18 = vpack.c.bf16 %v201_v14, %v201_v14  ;;  %v2412_v19 = vld [vmem:[%s3053_s20 + $0x18] sm:$0x1]  ;;  %v209_v20 = vpack.c.bf16 %v2411_v15, %v2411_v15  ;;  %v2415_v21 = vld [vmem:[%s3053_s20 + $0x20] sm:$0xff]  ;;  %v2416_v22 = vld [vmem:[%s3053_s20 + $0x28] sm:$0x1]  ;;  %p193_p4 = scmp.ge.s32.totalorder %s196_s19, 4  }
  0x1b   : >> { %v210_v24 = vpack.c.bf16 %v2412_v19, %v2412_v19  ;;  %v216_v25 = vpack.c.bf16 %v2415_v21, %v2415_v21  ;;  %v217_v26 = vpack.c.bf16 %v2416_v22, %v2416_v22  ;;  %v2419_v27 = vld [vmem:[%s3053_s20 + $0x30] sm:$0xff]  ;;  %v2420_v28 = vld [vmem:[%s3053_s20 + $0x38] sm:$0x1]  ;;  %v2431_v29 = vld [vmem:[%s3053_s20 + $0x60] sm:$0xff] }
  0x1c   : >> { %v255_v30 = vunpack.c.l.b16 %v202_v17  ;;  %v256_v31 = vunpack.c.l.b16 %v203_v18  ;;  %v260_v32 = vunpack.c.l.b16 %v209_v20  ;;  %v223_v33 = vpack.c.bf16 %v2419_v27, %v2419_v27  ;;  %v2432_v34 = vld [vmem:[%s3053_s20 + $0x68] sm:$0x1]  ;;  %v2435_v35 = vld [vmem:[%s3053_s20 + $0x70] sm:$0xff]  ;;  %v2436_v40 = vld [vmem:[%s3053_s20 + $0x78] sm:$0x1] }
  0x1d   : >> { %v261_v36 = vunpack.c.l.b16 %v210_v24  ;;  %v265_v37 = vunpack.c.l.b16 %v216_v25  ;;  %v266_v38 = vunpack.c.l.b16 %v217_v26  ;;  %v224_v39 = vpack.c.bf16 %v2420_v28, %v2420_v28  ;;  %v2423_v49 = vld [vmem:[%s3053_s20 + $0x40] sm:$0xff]  ;;  %v2424_v50 = vld [vmem:[%s3053_s20 + $0x48] sm:$0x1]  ;;  %v2427_v55 = vld [vmem:[%s3053_s20 + $0x50] sm:$0xff] }
  0x1e   : >> { %v257_v41 = vpack.c.b16 %v256_v31, %v255_v30  ;;  %v270_v42 = vunpack.c.l.b16 %v223_v33  ;;  %v244_v43 = vpack.c.bf16 %v2431_v29, %v2431_v29  ;;  %v245_v44 = vpack.c.bf16 %v2432_v34, %v2432_v34  ;;  %v2428_v56 = vld [vmem:[%s3053_s20 + $0x58] sm:$0x1]  ;;  %v5328_v5 = vld [vmem:[#allocation7_spill] sm:$0xff]  ;;  %v5329_v6 = vld [vmem:[#allocation8_spill] sm:$0xff] }
  0x1f   : >> { %v262_v45 = vpack.c.b16 %v261_v36, %v260_v32  ;;  %v267_v46 = vpack.c.b16 %v266_v38, %v265_v37  ;;  %v271_v47 = vunpack.c.l.b16 %v224_v39  ;;  %v251_v48 = vpack.c.bf16 %v2435_v35, %v2435_v35  ;;  %v5330_v7 = vld [vmem:[#allocation9_spill] sm:$0xff]  ;;  %v5331_v8 = vld [vmem:[#allocation10_spill] sm:$0xff] }
  0x20   : >> { %v337_v51 = vand.u32 %v3066_v23, %v257_v41  ;;  %v285_v52 = vunpack.c.l.b16 %v244_v43  ;;  %v286_v53 = vunpack.c.l.b16 %v245_v44  ;;  %v252_v54 = vpack.c.bf16 %v2436_v40, %v2436_v40 }
  0x21   : >> { %v340_v57 = vand.u32 %v3066_v23, %v262_v45  ;;  %v343_v58 = vand.u32 %v3066_v23, %v267_v46  ;;  %v272_v59 = vpack.c.b16 %v271_v47, %v270_v42  ;;  %v290_v60 = vunpack.c.l.b16 %v251_v48 }
  0x22   : >> { %367 = vmatpush.bf16.msra.mxu0 %v337_v51  ;;  %v287_v61 = vpack.c.b16 %v286_v53, %v285_v52  ;;  %v291_v62 = vunpack.c.l.b16 %v252_v54  ;;  %v230_v63 = vpack.c.bf16 %v2423_v49, %v2423_v49  ;;  %v231_v11 = vpack.c.bf16 %v2424_v50, %v2424_v50 }
  0x23   : >> { %400 = vmatpush.bf16.msra.mxu1 %v340_v57  ;;  %433 = vmatpush.bf16.msra.mxu2 %v343_v58  ;;  %v346_v12 = vand.u32 %v3066_v23, %v272_v59  ;;  %v237_v13 = vpack.c.bf16 %v2427_v55, %v2427_v55  ;;  %v238_v14 = vpack.c.bf16 %v2428_v56, %v2428_v56  ;;  %v310_v30 = vunpack.c.l.b16 %v5331_v8 }
  0x24   : >> { %v355_v15 = vand.u32 %v3066_v23, %v287_v61  ;;  %v292_v17 = vpack.c.b16 %v291_v62, %v290_v60  ;;  %v275_v18 = vunpack.c.l.b16 %v230_v63  ;;  %v276_v19 = vunpack.c.l.b16 %v231_v11 }
  0x25   : >> { %466 = vmatpush.bf16.msra.mxu3 %v346_v12  ;;  %2453 = vmatmul.msk.bf16.vlgmr.msra.gmra.mxu0 %vm316_vm2, %v3061_v16  ;;  %v280_v20 = vunpack.c.l.b16 %v237_v13  ;;  %v281_v21 = vunpack.c.l.b16 %v238_v14  ;;  %v2444_v28 = vor.u32 %v5326_v3, %v5325_v2  ;;  %v2448_v29 = vor.u32 %v5328_v5, %v5327_v4 }
  0x26   : >> { %2458 = vmatmul.msk.bf16.vlgmr.msra.gmra.mxu1 %vm316_vm2, %v3061_v16  ;;  %2463 = vmatmul.msk.bf16.vlgmr.msra.gmra.mxu2 %vm316_vm2, %v3061_v16  ;;  %v358_v22 = vand.u32 %v3066_v23, %v292_v17  ;;  %v277_v24 = vpack.c.b16 %v276_v19, %v275_v18  ;;  %v3113_v31 = vpack.c.b16 %v310_v30, %v310_v30 }
  0x27   : >> { %565 = vmatpush.bf16.msrb.mxu2 %v355_v15  ;;  %v282_v25 = vpack.c.b16 %v281_v21, %v280_v20 }
  0x28   : >> { %2468 = vmatmul.msk.bf16.vlgmr.msra.gmra.mxu3 %vm316_vm2, %v3061_v16  ;;  %v349_v26 = vand.u32 %v3066_v23, %v277_v24 }
  0x29   : >> { %598 = vmatpush.bf16.msrb.mxu3 %v358_v22  ;;  %v352_v27 = vand.u32 %v3066_v23, %v282_v25  ;;  %v2452_v23 = vor.u32 %v5330_v7, %v5329_v6 }
  0x2a   : >> { %499 = vmatpush.bf16.msrb.mxu0 %v349_v26 }
  0x2b   : >> { %532 = vmatpush.bf16.msrb.mxu1 %v352_v27 }
  0x35   : >> { %2454 = vmatmul.msk.bf16.gmra.mxu0 %vm316_vm2, %v2444_v28 }
  0x36   : >> { %2459 = vmatmul.msk.bf16.gmra.mxu1 %vm316_vm2, %v2444_v28  ;;  %2464 = vmatmul.msk.bf16.gmra.mxu2 %vm316_vm2, %v2444_v28 }
  0x38   : >> { %2469 = vmatmul.msk.bf16.gmra.mxu3 %vm316_vm2, %v2444_v28 }
  0x45   : >> { %2455 = vmatmul.msk.bf16.gmra.mxu0 %vm316_vm2, %v2448_v29 }
  0x46   : >> { %2460 = vmatmul.msk.bf16.gmra.mxu1 %vm316_vm2, %v2448_v29  ;;  %2465 = vmatmul.msk.bf16.gmra.mxu2 %vm316_vm2, %v2448_v29 }
  0x48   : >> { %2470 = vmatmul.msk.bf16.gmra.mxu3 %vm316_vm2, %v2448_v29 }
  0x55   : >> { %2456 = vmatmul.msk.bf16.gmra.mxu0 %vm316_vm2, %v2452_v23 }
  0x56   : >> { %2461 = vmatmul.msk.bf16.gmra.mxu1 %vm316_vm2, %v2452_v23  ;;  %2466 = vmatmul.msk.bf16.gmra.mxu2 %vm316_vm2, %v2452_v23 }
  0x58   : >> { %2471 = vmatmul.msk.bf16.gmra.mxu3 %vm316_vm2, %v2452_v23 }
  0x65   : >> { %2457 = vmatmul.msk.bf16.gmra.mxu0 %vm316_vm2, %v3113_v31 }
  0x66   : >> { %2462 = vmatmul.msk.bf16.gmra.mxu1 %vm316_vm2, %v3113_v31  ;;  %2467 = vmatmul.msk.bf16.gmra.mxu2 %vm316_vm2, %v3113_v31 }
  0x68   : >> { %2472 = vmatmul.msk.bf16.gmra.mxu3 %vm316_vm2, %v3113_v31 }
  0x75   : >> { %2473 = vmatmul.msk.bf16.vlgmr.msrb.gmra.mxu0 %vm316_vm2, %v3061_v16 }
  0x76   : >> { %2478 = vmatmul.msk.bf16.vlgmr.msrb.gmra.mxu1 %vm316_vm2, %v3061_v16  ;;  %2483 = vmatmul.msk.bf16.vlgmr.msrb.gmra.mxu2 %vm316_vm2, %v3061_v16 }
  0x78   : >> { %2488 = vmatmul.msk.bf16.vlgmr.msrb.gmra.mxu3 %vm316_vm2, %v3061_v16 }
  0x85   : >> { %2474 = vmatmul.msk.bf16.gmra.mxu0 %vm316_vm2, %v2444_v28 }
  0x86   : >> { %2479 = vmatmul.msk.bf16.gmra.mxu1 %vm316_vm2, %v2444_v28  ;;  %2484 = vmatmul.msk.bf16.gmra.mxu2 %vm316_vm2, %v2444_v28 }
  0x88   : >> { %2489 = vmatmul.msk.bf16.gmra.mxu3 %vm316_vm2, %v2444_v28 }
  0x95   : >> { %2475 = vmatmul.msk.bf16.gmra.mxu0 %vm316_vm2, %v2448_v29 }
  0x96   : >> { %2480 = vmatmul.msk.bf16.gmra.mxu1 %vm316_vm2, %v2448_v29  ;;  %2485 = vmatmul.msk.bf16.gmra.mxu2 %vm316_vm2, %v2448_v29 }
  0x98   : >> { %2490 = vmatmul.msk.bf16.gmra.mxu3 %vm316_vm2, %v2448_v29 }
  0xa2   : >> { %v3139_v32 = vpop.f32.mrf.mxu0 }
  0xa3   : >> { %v2493_v16 = vmul.f32 -1.442695, %v3139_v32  ;;  %v3142_v33 = vpop.f32.mrf.mxu1 }
  0xa4   : >> { %v2494_v34 = vmul.f32 -1.442695, %v3142_v33 }
  0xa5   : >> { %2646 = vpow2.f32 %v2493_v16  ;;  %2476 = vmatmul.msk.bf16.gmra.mxu0 %vm316_vm2, %v2452_v23 }
  0xa6   : >> { %2648 = vpow2.f32 %v2494_v34  ;;  %2481 = vmatmul.msk.bf16.gmra.mxu1 %vm316_vm2, %v2452_v23  ;;  %2486 = vmatmul.msk.bf16.gmra.mxu2 %vm316_vm2, %v2452_v23 }
  0xa8   : >> { %2491 = vmatmul.msk.bf16.gmra.mxu3 %vm316_vm2, %v2452_v23 }
  0xa9   : >> { %v3149_v35 = vpop.f32.mrf.mxu2 }
  0xaa   : >> { %v2495_v36 = vmul.f32 -1.442695, %v3149_v35  ;;  %v3152_v37 = vpop.f32.mrf.mxu0 }
  0xab   : >> { %v2647_v38 = vpop.eup %2646  ;;  %v3154_v39 = vpop.f32.mrf.mxu3  ;;  %v2501_v40 = vmul.f32 -1.442695, %v3152_v37 }
  0xac   : >> { %v3157_v41 = vpop.f32.mrf.mxu1  ;;  %v2649_v42 = vpop.eup %2648  ;;  %v840_v43 = vadd.f32 1.0, %v2647_v38  ;;  %2650 = vpow2.f32 %v2495_v36  ;;  %v2496_v44 = vmul.f32 -1.442695, %v3154_v39 }
  0xad   : >> { %v841_v45 = vadd.f32 1.0, %v2649_v42  ;;  %2652 = vpow2.f32 %v2501_v40  ;;  %v2502_v46 = vmul.f32 -1.442695, %v3157_v41 }
  0xae   : >> { %2654 = vrcp.f32 %v840_v43  ;;  %vm917_vm3 = vweird.f32 %v840_v43  ;;  %v921_v56 = vand.u32 2147483647, %v840_v43  ;;  %v923_v58 = vand.u32 2147483648, %v840_v43 }
  0xaf   : >> { %2656 = vrcp.f32 %v841_v45  ;;  %v936_v60 = vand.u32 2147483647, %v841_v45  ;;  %v938_v61 = vand.u32 2147483648, %v841_v45  ;;  %vm932_vm6 = vweird.f32 %v841_v45 }
  0xb0   : >> { %2658 = vpow2.f32 %v2496_v44  ;;  %vm3183_vm5 = vcmp.eq.f32.partialorder %v921_v56, 8.507059e+37  ;;  %v924_v20 = vor.u32 1.1754944e-38, %v923_v58 }
  0xb1   : >> { %v3161_v47 = vpop.f32.mrf.mxu2  ;;  %2660 = vpow2.f32 %v2502_v46  ;;  %vm3199_vm9 = vcmp.eq.f32.partialorder %v936_v60, 8.507059e+37  ;;  %v939_v27 = vor.u32 1.1754944e-38, %v938_v61 }
  0xb2   : >> { %v2651_v48 = vpop.eup %2650  ;;  %v2503_v49 = vmul.f32 -1.442695, %v3161_v47  ;;  %v3190_v17 = vpop.f32.mrf.mxu0 }
  0xb3   : >> { %v2653_v50 = vpop.eup %2652  ;;  %v3164_v51 = vadd.f32 1.0, %v2651_v48  ;;  %v3188_v15 = vpop.f32.mrf.mxu3  ;;  %v2509_v16 = vmul.f32 -1.442695, %v3190_v17 }
  0xb4   : >> { %v2655_v52 = vpop.eup %2654  ;;  %v3166_v53 = vadd.f32 1.0, %v2653_v50  ;;  %2662 = vpow2.f32 %v2503_v49  ;;  %v3203_v24 = vpop.f32.mrf.mxu1 }
  0xb5   : >> { %v3168_v54 = vpop.eup %2656  ;;  %v913_v55 = vmul.f32 %v2655_v52, %v840_v43  ;;  %2664 = vrcp.f32 %v3164_v51  ;;  %2477 = vmatmul.msk.bf16.gmra.mxu0 %vm316_vm2, %v3113_v31  ;;  %vm918_vm4 = vweird.f32 %v2655_v52  ;;  %v953_v28 = vand.u32 2147483648, %v3164_v51 }
  0xb6   : >> { %v2659_v57 = vpop.eup %2658  ;;  %v928_v59 = vmul.f32 %v3168_v54, %v841_v45  ;;  %2482 = vmatmul.msk.bf16.gmra.mxu1 %vm316_vm2, %v3113_v31  ;;  %2487 = vmatmul.msk.bf16.gmra.mxu2 %vm316_vm2, %v3113_v31  ;;  %2666 = vrcp.f32 %v3166_v53  ;;  %vm3193_vm7 = vmor %vm917_vm3, %vm918_vm4  ;;  %vm933_vm8 = vweird.f32 %v3168_v54  ;;  %v2510_v42 = vmul.f32 -1.442695, %v3203_v24 }
  0xb7   : >> { %v914_v62 = vsub.f32 1.0, %v913_v55  ;;  %v3178_v63 = vadd.f32 1.0, %v2659_v57  ;;  %v2661_v11 = vpop.eup %2660  ;;  %vm3218_vm10 = vmor %vm932_vm6, %vm933_vm8  ;;  %v1041_v46 = vand.u32 2147483647, %v3166_v53  ;;  %v1043_v48 = vand.u32 2147483648, %v3166_v53 }
  0xb8   : >> { %v929_v12 = vsub.f32 1.0, %v928_v59  ;;  %2492 = vmatmul.msk.bf16.gmra.mxu3 %vm316_vm2, %v3113_v31  ;;  %v3208_v29 = vadd.f32 1.0, %v2661_v11  ;;  %v2504_v31 = vmul.f32 -1.442695, %v3188_v15  ;;  %vm947_vm11 = vweird.f32 %v3164_v51 }
  0xb9   : >> { %v915_v13 = vmul.f32 %v2655_v52, %v914_v62  ;;  %2668 = vrcp.f32 %v3178_v63  ;;  %v951_v45 = vand.u32 2147483647, %v3164_v51  ;;  %v3233_v50 = vor.u32 1.1754944e-38, %v953_v28  ;;  %v3260_v19 = vpop.f32.mrf.mxu2 }
  0xba   : >> { %v2663_v18 = vpop.eup %2662  ;;  %v930_v21 = vmul.f32 %v3168_v54, %v929_v12  ;;  %2670 = vrcp.f32 %v3208_v29  ;;  %vm1037_vm12 = vweird.f32 %v3166_v53  ;;  %v966_v57 = vand.u32 2147483647, %v3178_v63 }
  0xbb   : >> { %v3205_v25 = vpop.eup %2664  ;;  %v916_v26 = vadd.f32 %v2655_v52, %v915_v13  ;;  %v3223_v40 = vadd.f32 1.0, %v2663_v18  ;;  %v1056_v60 = vand.u32 2147483647, %v3208_v29  ;;  %vm3248_vm14 = vcmp.eq.f32.partialorder %v1041_v46, 8.507059e+37 }
  0xbc   : >> { %v931_v23 = vadd.f32 %v3168_v54, %v930_v21  ;;  %v943_v30 = vmul.f32 %v3205_v25, %v3164_v51  ;;  %v2667_v34 = vpop.eup %2666  ;;  %vm948_vm13 = vweird.f32 %v3205_v25  ;;  %vm1052_vm1 = vweird.f32 %v3208_v29 }
  0xbd   : >> { %v920_v36 = vsel %vm3193_vm7, %v2655_v52, %v916_v26  ;;  %v1033_v44 = vmul.f32 %v2667_v34, %v3166_v53  ;;  %2672 = vrcp.f32 %v3223_v40  ;;  %vm1038_vm15 = vweird.f32 %v2667_v34  ;;  %vm3286_vm7 = vmor %vm947_vm11, %vm948_vm13 }
  0xbe   : >> { %v944_v43 = vsub.f32 1.0, %v943_v30  ;;  %v925_v52 = vsel %vm3183_vm5, %v924_v20, %v920_v36  ;;  %v935_v55 = vsel %vm3218_vm10, %v3168_v54, %v931_v23  ;;  %v1044_v54 = vor.u32 1.1754944e-38, %v1043_v48  ;;  %v3262_v20 = vpop.f32.mrf.mxu3  ;;  %vm1039_vm6 = vmor %vm1037_vm12, %vm1038_vm15 }
  0xbf   : >> { %v3229_v49 = vpop.eup %2668  ;;  %v1034_v59 = vsub.f32 1.0, %v1033_v44  ;;  %2674 = vpow2.f32 %v2504_v31  ;;  %v3254_v13 = vmul.f32 %v925_v52, %v3139_v32  ;;  %v940_v14 = vsel %vm3199_vm9, %v939_v27, %v935_v55  ;;  %v3300_v52 = vpop.f32.mrf.mxu0 }
  0xc0   : >> { %v958_v56 = vmul.f32 %v3229_v49, %v3178_v63  ;;  %v945_v58 = vmul.f32 %v3205_v25, %v944_v43  ;;  %v2671_v11 = vpop.eup %2670  ;;  %vm963_vm2 = vweird.f32 %v3229_v49  ;;  %vm962_vm3 = vweird.f32 %v3178_v63 }
  0xc1   : >> { %v1035_v12 = vmul.f32 %v2667_v34, %v1034_v59  ;;  %v1048_v18 = vmul.f32 %v2671_v11, %v3208_v29  ;;  %vm3266_vm4 = vcmp.eq.f32.partialorder %v1056_v60, 8.507059e+37  ;;  %v1058_v32 = vand.u32 2147483648, %v3208_v29  ;;  %vm3323_vm11 = vmor %vm962_vm3, %vm963_vm2 }
  0xc2   : >> { %v959_v61 = vsub.f32 1.0, %v958_v56  ;;  %v946_v21 = vadd.f32 %v3205_v25, %v945_v58  ;;  %vm3271_vm5 = vcmp.eq.f32.partialorder %v951_v45, 8.507059e+37  ;;  %v1071_v30 = vand.u32 2147483647, %v3223_v40 }
  0xc3   : >> { %v1036_v26 = vadd.f32 %v2667_v34, %v1035_v12  ;;  %v1049_v23 = vsub.f32 1.0, %v1048_v18  ;;  %2676 = vpow2.f32 %v2509_v16  ;;  %v2673_v31 = vpop.eup %2672  ;;  %v2511_v38 = vmul.f32 -1.442695, %v3260_v19 }
  0xc4   : >> { %v960_v27 = vmul.f32 %v3229_v49, %v959_v61  ;;  %2678 = vpow2.f32 %v2510_v42  ;;  %v2512_v43 = vmul.f32 -1.442695, %v3262_v20  ;;  %vm1053_vm8 = vweird.f32 %v2671_v11 }
  0xc5   : >> { %v1040_v36 = vsel %vm1039_vm6, %v2667_v34, %v1036_v26  ;;  %v1050_v46 = vmul.f32 %v2671_v11, %v1049_v23  ;;  %v1063_v16 = vmul.f32 %v2673_v31, %v3223_v40  ;;  %v2675_v34 = vpop.eup %2674  ;;  %v950_v42 = vsel %vm3286_vm7, %v3205_v25, %v946_v21  ;;  %vm1054_vm9 = vmor %vm1052_vm1, %vm1053_vm8 }
  0xc6   : >> { %v1045_v53 = vsel %vm3248_vm14, %v1044_v54, %v1040_v36  ;;  %v1059_v51 = vor.u32 1.1754944e-38, %v1058_v32  ;;  %v1073_v45 = vand.u32 2147483648, %v3223_v40  ;;  %v3302_v58 = vadd.f32 1.0, %v2675_v34 }
  0xc7   : >> { %v3297_v48 = vmul.f32 %v1045_v53, %v3152_v37  ;;  %v1051_v55 = vadd.f32 %v2671_v11, %v1050_v46  ;;  %v1064_v56 = vsub.f32 1.0, %v1063_v16  ;;  %2680 = vpow2.f32 %v2511_v38 }
  0xc8   : >> { %v961_v59 = vadd.f32 %v3229_v49, %v960_v27  ;;  %vm1068_vm10 = vweird.f32 %v2673_v31  ;;  %2682 = vpow2.f32 %v2512_v43  ;;  %v2517_v62 = vmul.f32 -1.442695, %v3300_v52 }
  0xc9   : >> { %v2677_v37 = vpop.eup %2676  ;;  %v1055_v25 = vsel %vm1054_vm9, %v2671_v11, %v1051_v55  ;;  %v1065_v61 = vmul.f32 %v2673_v31, %v1064_v56  ;;  %2684 = vrcp.f32 %v3302_v58  ;;  %v3312_v12 = vmul.f32 %v940_v14, %v3142_v33 }
  0xca   : >> { %v2679_v54 = vpop.eup %2678  ;;  %v968_v18 = vand.u32 2147483648, %v3178_v63  ;;  %v1060_v21 = vsel %vm3266_vm4, %v1059_v51, %v1055_v25  ;;  %v3317_v29 = vadd.f32 1.0, %v2677_v37  ;;  %vm1067_vm12 = vweird.f32 %v3223_v40 }
  0xcb   : >> { %v3328_v26 = vmul.f32 %v1060_v21, %v3157_v41  ;;  %v1066_v33 = vadd.f32 %v2673_v31, %v1065_v61  ;;  %v3331_v14 = vadd.f32 1.0, %v2679_v54  ;;  %v955_v28 = vsel %vm3271_vm5, %v3233_v50, %v950_v42  ;;  %vm1069_vm13 = vmor %vm1067_vm12, %vm1068_vm10  ;;  %v3344_v50 = vpop.f32.mrf.mxu1 }
  0xcc   : >> { %vm1072_vm14 = vcmp.eq.f32.partialorder %v1071_v30, 8.507059e+37  ;;  %v1074_v32 = vor.u32 1.1754944e-38, %v1073_v45  ;;  %2686 = vrcp.f32 %v3317_v29  ;;  %v965_v41 = vsel %vm3323_vm11, %v3229_v49, %v961_v59 }
  0xcd   : >> { %v2681_v27 = vpop.eup %2680  ;;  %v1070_v23 = vsel %vm1069_vm13, %v2673_v31, %v1066_v33  ;;  %2688 = vpow2.f32 %v2517_v62  ;;  %v969_v38 = vor.u32 1.1754944e-38, %v968_v18  ;;  %v3347_v43 = vmul.f32 %v955_v28, %v3149_v35  ;;  %v3389_v28 = vpop.f32.mrf.mxu2 }
  0xce   : >> { %v2683_v36 = vpop.eup %2682  ;;  %v1075_v22 = vsel %vm1072_vm14, %v1074_v32, %v1070_v23  ;;  %2690 = vrcp.f32 %v3331_v14  ;;  %vm967_vm15 = vcmp.eq.f32.partialorder %v966_v57, 8.507059e+37  ;;  %v1086_v53 = vand.u32 2147483647, %v3302_v58 }
  0xcf   : >> { %v2685_v30 = vpop.eup %2684  ;;  %5350 = vst [vmem:[#allocation13_spill] sm:$0xff] %v3347_v43  ;;  %v3352_v49 = vmul.f32 %v1075_v22, %v3161_v47  ;;  %v970_v44 = vsel %vm967_vm15, %v969_v38, %v965_v41  ;;  %v3356_v46 = vadd.f32 1.0, %v2681_v27  ;;  %v3360_v34 = vadd.f32 1.0, %v2683_v36  ;;  %v3396_v41 = vpop.f32.mrf.mxu3 }
  0xd0   : >> { %v1078_v31 = vmul.f32 %v2685_v30, %v3302_v58  ;;  %v2518_v35 = vmul.f32 -1.442695, %v3344_v50  ;;  %v3367_v57 = vmul.f32 %v970_v44, %v3154_v39  ;;  %v1088_v51 = vand.u32 2147483648, %v3302_v58 }
  0xd1   : >> { %5351 = vst [vmem:[#allocation14_spill] sm:$0xff] %v3352_v49  ;;  %2692 = vrcp.f32 %v3356_v46  ;;  %vm1082_vm1 = vweird.f32 %v3302_v58  ;;  %vm1083_vm2 = vweird.f32 %v2685_v30  ;;  %vm3376_vm3 = vcmp.eq.f32.partialorder %v1086_v53, 8.507059e+37 }
  0xd2   : >> { %v3363_v42 = vpop.eup %2686  ;;  %v1079_v63 = vsub.f32 1.0, %v1078_v31  ;;  %5352 = vst [vmem:[#allocation15_spill] sm:$0xff] %v3367_v57  ;;  %2694 = vrcp.f32 %v3360_v34  ;;  %v1161_v39 = vand.u32 2147483647, %v3317_v29  ;;  %v1163_v62 = vand.u32 2147483648, %v3317_v29  ;;  %vm1084_vm4 = vmor %vm1082_vm1, %vm1083_vm2 }
  0xd3   : >> { %v2689_v47 = vpop.eup %2688  ;;  %v1153_v45 = vmul.f32 %v3363_v42, %v3317_v29  ;;  %2696 = vpow2.f32 %v2518_v35  ;;  %v1178_v54 = vand.u32 2147483648, %v3331_v14  ;;  %v1089_v58 = vor.u32 1.1754944e-38, %v1088_v51  ;;  %v3423_v59 = vpop.f32.mrf.mxu1 }
  0xd4   : >> { %v3373_v55 = vpop.eup %2690  ;;  %v1080_v56 = vmul.f32 %v2685_v30, %v1079_v63  ;;  %v3385_v18 = vadd.f32 1.0, %v2689_v47  ;;  %v1176_v33 = vand.u32 2147483647, %v3331_v14  ;;  %vm1157_vm5 = vweird.f32 %v3317_v29 }
  0xd5   : >> { %v1154_v37 = vsub.f32 1.0, %v1153_v45  ;;  %v1168_v25 = vmul.f32 %v3373_v55, %v3331_v14  ;;  %vm1172_vm6 = vweird.f32 %v3331_v14  ;;  %vm1158_vm7 = vweird.f32 %v3363_v42 }
  0xd6   : >> { %v1081_v61 = vadd.f32 %v2685_v30, %v1080_v56  ;;  %2698 = vrcp.f32 %v3385_v18  ;;  %vm3403_vm8 = vcmp.eq.f32.partialorder %v1161_v39, 8.507059e+37  ;;  %v1164_v31 = vor.u32 1.1754944e-38, %v1163_v62  ;;  %vm3431_vm11 = vmor %vm1157_vm5, %vm1158_vm7 }
  0xd7   : >> { %v1155_v21 = vmul.f32 %v3363_v42, %v1154_v37  ;;  %v1169_v11 = vsub.f32 1.0, %v1168_v25  ;;  %v3391_v32 = vpop.eup %2692  ;;  %v1179_v53 = vor.u32 1.1754944e-38, %v1178_v54  ;;  %vm3418_vm9 = vcmp.eq.f32.partialorder %v1176_v33, 8.507059e+37  ;;  %v3470_v37 = vpop.f32.mrf.mxu2 }
  0xd8   : >> { %v1085_v27 = vsel %vm1084_vm4, %v2685_v30, %v1081_v61  ;;  %v3398_v23 = vpop.eup %2694  ;;  %v1183_v22 = vmul.f32 %v3391_v32, %v3356_v46  ;;  %v3409_v30 = vpop.f32.mrf.mxu0  ;;  %vm1187_vm10 = vweird.f32 %v3356_v46  ;;  %v1193_v39 = vand.u32 2147483648, %v3356_v46 }
  0xd9   : >> { %v1090_v36 = vsel %vm3376_vm3, %v1089_v58, %v1085_v27  ;;  %v1198_v35 = vmul.f32 %v3398_v23, %v3360_v34  ;;  %v2697_v63 = vpop.eup %2696  ;;  %v1156_v47 = vadd.f32 %v3363_v42, %v1155_v21  ;;  %v1170_v51 = vmul.f32 %v3373_v55, %v1169_v11 }
  0xda   : >> { %v3412_v44 = vmul.f32 %v1090_v36, %v3188_v15  ;;  %v1184_v56 = vsub.f32 1.0, %v1183_v22  ;;  %v1208_v61 = vand.u32 2147483648, %v3360_v34  ;;  %vm1173_vm12 = vweird.f32 %v3373_v55 }
  0xdb   : >> { %v1199_v25 = vsub.f32 1.0, %v1198_v35  ;;  %v1191_v62 = vand.u32 2147483647, %v3356_v46  ;;  %v1206_v54 = vand.u32 2147483647, %v3360_v34  ;;  %vm1202_vm13 = vweird.f32 %v3360_v34  ;;  %vm3454_vm14 = vmor %vm1172_vm6, %vm1173_vm12 }
  0xdc   : >> { %5357 = vst [vmem:[#allocation16_spill] sm:$0xff] %v3412_v44  ;;  %v2519_v58 = vmul.f32 -1.442695, %v3389_v28  ;;  %v2699_v21 = vpop.eup %2698  ;;  %v1185_v29 = vmul.f32 %v3391_v32, %v1184_v56  ;;  %v3443_v11 = vadd.f32 1.0, %v2697_v63  ;;  %v2520_v33 = vmul.f32 -1.442695, %v3396_v41 }
  0xdd   : >> { %v1160_v27 = vsel %vm3431_vm11, %v3363_v42, %v1156_v47  ;;  %v1171_v36 = vadd.f32 %v3373_v55, %v1170_v51  ;;  %v1200_v22 = vmul.f32 %v3398_v23, %v1199_v25  ;;  %v1273_v35 = vmul.f32 %v2699_v21, %v3385_v18 }
  0xde   : >> { %vm1188_vm15 = vweird.f32 %v3391_v32  ;;  %v1194_v63 = vor.u32 1.1754944e-38, %v1193_v39  ;;  %v1209_v15 = vor.u32 1.1754944e-38, %v1208_v61  ;;  %2700 = vrcp.f32 %v3443_v11 }
  0xdf   : >> { %vm3460_vm1 = vcmp.eq.f32.partialorder %v1191_v62, 8.507059e+37  ;;  %vm1203_vm2 = vweird.f32 %v3398_v23  ;;  %vm3465_vm3 = vcmp.eq.f32.partialorder %v1206_v54, 8.507059e+37  ;;  %v1274_v14 = vsub.f32 1.0, %v1273_v35  ;;  %v3476_v62 = vpop.f32.mrf.mxu3  ;;  %vm3488_vm5 = vmor %vm1187_vm10, %vm1188_vm15 }
  0xe0   : >> { %v1281_v51 = vand.u32 2147483647, %v3385_v18  ;;  %2702 = vpow2.f32 %v2519_v58  ;;  %v1165_v39 = vsel %vm3403_vm8, %v1164_v31, %v1160_v27  ;;  %v1186_v25 = vadd.f32 %v3391_v32, %v1185_v29  ;;  %v3482_v58 = vpop.f32.mrf.mxu0  ;;  %vm3503_vm7 = vmor %vm1202_vm13, %vm1203_vm2 }
  0xe1   : >> { %v1283_v61 = vand.u32 2147483648, %v3385_v18  ;;  %2704 = vpow2.f32 %v2520_v33  ;;  %v1175_v54 = vsel %vm3454_vm14, %v3373_v55, %v1171_v36  ;;  %v1201_v35 = vadd.f32 %v3398_v23, %v1200_v22  ;;  %v3508_v36 = vpop.f32.mrf.mxu1 }
  0xe2   : >> { %v1275_v16 = vmul.f32 %v2699_v21, %v1274_v14  ;;  %vm1278_vm4 = vweird.f32 %v2699_v21  ;;  %vm1277_vm6 = vweird.f32 %v3385_v18  ;;  %v2525_v31 = vmul.f32 -1.442695, %v3409_v30 }
  0xe3   : >> { %v2526_v55 = vmul.f32 -1.442695, %v3423_v59  ;;  %v2527_v29 = vmul.f32 -1.442695, %v3470_v37  ;;  %v3497_v33 = vmul.f32 %v1165_v39, %v3190_v17  ;;  %vm1282_vm8 = vcmp.eq.f32.partialorder %v1281_v51, 8.507059e+37  ;;  %vm1279_vm10 = vmor %vm1277_vm6, %vm1278_vm4 }
  0xe4   : >> { %v1276_v27 = vadd.f32 %v2699_v21, %v1275_v16  ;;  %v2528_v18 = vmul.f32 -1.442695, %v3476_v62  ;;  %v2701_v22 = vpop.eup %2700  ;;  %v1180_v56 = vsel %vm3418_vm9, %v1179_v53, %v1175_v54  ;;  %v1190_v17 = vsel %vm3488_vm5, %v3391_v32, %v1186_v25 }
  0xe5   : >> { %v1284_v34 = vor.u32 1.1754944e-38, %v1283_v61  ;;  %2706 = vpow2.f32 %v2525_v31  ;;  %v1205_v16 = vsel %vm3503_vm7, %v3398_v23, %v1201_v35  ;;  %v1288_v39 = vmul.f32 %v2701_v22, %v3443_v11 }
  0xe6   : >> { %v2703_v14 = vpop.eup %2702  ;;  %v1280_v51 = vsel %vm1279_vm10, %v2699_v21, %v1276_v27  ;;  %2708 = vpow2.f32 %v2526_v55  ;;  %v1296_v53 = vand.u32 2147483647, %v3443_v11  ;;  %v1195_v23 = vsel %vm3460_vm1, %v1194_v63, %v1190_v17 }
  0xe7   : >> { %v2705_v40 = vpop.eup %2704  ;;  %v1285_v45 = vsel %vm1282_vm8, %v1284_v34, %v1280_v51  ;;  %v3521_v54 = vadd.f32 1.0, %v2703_v14  ;;  %2710 = vpow2.f32 %v2527_v29  ;;  %v1289_v25 = vsub.f32 1.0, %v1288_v39  ;;  %v3547_v42 = vpop.f32.mrf.mxu3 }
  0xe8   : >> { %v3524_v32 = vmul.f32 %v1285_v45, %v3300_v52  ;;  %v3526_v61 = vadd.f32 1.0, %v2705_v40  ;;  %2712 = vpow2.f32 %v2528_v18  ;;  %v1210_v21 = vsel %vm3465_vm3, %v1209_v15, %v1205_v16  ;;  %v3545_v15 = vpop.f32.mrf.mxu2  ;;  %v3555_v27 = vpop.f32.mrf.mxu0 }
  0xe9   : >> { %v1298_v35 = vand.u32 2147483648, %v3443_v11  ;;  %2714 = vrcp.f32 %v3521_v54  ;;  %v1290_v31 = vmul.f32 %v2701_v22, %v1289_v25  ;;  %vm1293_vm9 = vweird.f32 %v2701_v22  ;;  %v3571_v39 = vpop.f32.mrf.mxu1 }
  0xea   : >> { %2716 = vrcp.f32 %v3526_v61  ;;  %v3538_v40 = vmul.f32 %v1180_v56, %v3203_v24  ;;  %vm1292_vm11 = vweird.f32 %v3443_v11  ;;  %vm3541_vm12 = vcmp.eq.f32.partialorder %v1296_v53, 8.507059e+37 }
  0xeb   : >> { %v2707_v52 = vpop.eup %2706  ;;  %v3550_v55 = vmul.f32 %v1195_v23, %v3260_v19  ;;  %v1291_v29 = vadd.f32 %v2701_v22, %v1290_v31  ;;  %v2533_v24 = vmul.f32 -1.442695, %v3482_v58  ;;  %v3558_v18 = vmul.f32 %v1210_v21, %v3262_v20  ;;  %vm1294_vm13 = vmor %vm1292_vm11, %vm1293_vm9 }
  0xec   : >> { %v2709_v47 = vpop.eup %2708  ;;  %v3552_v46 = vadd.f32 1.0, %v2707_v52  ;;  %v1299_v56 = vor.u32 1.1754944e-38, %v1298_v35  ;;  %v2534_v34 = vmul.f32 -1.442695, %v3508_v36  ;;  %v3566_v16 = vmul.f32 -1.442695, %v3545_v15 }
  0xed   : >> { %5374 = vst [vmem:[#allocation17_spill] sm:$0xff] %v3550_v55  ;;  %v2711_v11 = vpop.eup %2710  ;;  %v3561_v17 = vadd.f32 1.0, %v2709_v47  ;;  %v1295_v14 = vsel %vm1294_vm13, %v2701_v22, %v1291_v29  ;;  %v3569_v51 = vmul.f32 -1.442695, %v3547_v42  ;;  %v1311_v53 = vand.u32 2147483647, %v3521_v54 }
  0xee   : >> { %5375 = vst [vmem:[#allocation18_spill] sm:$0xff] %v3558_v18  ;;  %v2713_v19 = vpop.eup %2712  ;;  %2718 = vrcp.f32 %v3552_v46  ;;  %v1300_v45 = vsel %vm3541_vm12, %v1299_v56, %v1295_v14  ;;  %v3578_v22 = vmul.f32 -1.442695, %v3555_v27  ;;  %v1313_v35 = vand.u32 2147483648, %v3521_v54 }
  0xef   : >> { %v2715_v20 = vpop.eup %2714  ;;  %2720 = vrcp.f32 %v3561_v17  ;;  %v3581_v23 = vmul.f32 %v1300_v45, %v3344_v50  ;;  %vm1307_vm14 = vweird.f32 %v3521_v54  ;;  %v1326_v52 = vand.u32 2147483647, %v3526_v61 }
  0xf0   : >> { %v2717_v25 = vpop.eup %2716  ;;  %v1303_v21 = vmul.f32 %v2715_v20, %v3521_v54  ;;  %2722 = vpow2.f32 %v2533_v24  ;;  %v3589_v63 = vmul.f32 -1.442695, %v3571_v39  ;;  %v1328_v50 = vand.u32 2147483648, %v3526_v61 }
  0xf1   : >> { %v1318_v31 = vmul.f32 %v2717_v25, %v3526_v61  ;;  %v3594_v56 = vadd.f32 1.0, %v2711_v11  ;;  %vm3596_vm15 = vcmp.eq.f32.partialorder %v1311_v53, 8.507059e+37  ;;  %vm1322_vm1 = vweird.f32 %v3526_v61 }
  0xf2   : >> { %v1304_v29 = vsub.f32 1.0, %v1303_v21  ;;  %v3601_v45 = vadd.f32 1.0, %v2713_v19  ;;  %vm1308_vm2 = vweird.f32 %v2715_v20  ;;  %v1314_v0 = vor.u32 1.1754944e-38, %v1313_v35 }
  0xf3   : >> { %v1319_v24 = vsub.f32 1.0, %v1318_v31  ;;  %2724 = vrcp.f32 %v3594_v56  ;;  %vm1323_vm3 = vweird.f32 %v2717_v25  ;;  %vm3608_vm4 = vcmp.eq.f32.partialorder %v1326_v52, 8.507059e+37  ;;  %vm1309_vm5 = vmor %vm1307_vm14, %vm1308_vm2 }
  0xf4   : >> { %v3603_v60 = vpop.eup %2718  ;;  %v1305_v38 = vmul.f32 %v2715_v20, %v1304_v29  ;;  %v1329_v1 = vor.u32 1.1754944e-38, %v1328_v50  ;;  %2726 = vpow2.f32 %v2534_v34  ;;  %vm1397_vm6 = vweird.f32 %v3552_v46  ;;  %vm1324_vm7 = vmor %vm1322_vm1, %vm1323_vm3 }
  0xf5   : >> { %v3606_v21 = vpop.eup %2720  ;;  %v1320_v11 = vmul.f32 %v2717_v25, %v1319_v24  ;;  %v1393_v31 = vmul.f32 %v3603_v60, %v3552_v46  ;;  %2728 = vrcp.f32 %v3601_v45  ;;  %v1403_v50 = vand.u32 2147483648, %v3552_v46 }
  0xf6   : >> { %v2723_v19 = vpop.eup %2722  ;;  %v1306_v47 = vadd.f32 %v2715_v20, %v1305_v38  ;;  %v1408_v29 = vmul.f32 %v3606_v21, %v3561_v17  ;;  %v1401_v38 = vand.u32 2147483647, %v3552_v46  ;;  %vm1412_vm8 = vweird.f32 %v3561_v17 }
  0xf7   : >> { %v1321_v35 = vadd.f32 %v2717_v25, %v1320_v11  ;;  %v1394_v24 = vsub.f32 1.0, %v1393_v31  ;;  %v3627_v31 = vadd.f32 1.0, %v2723_v19  ;;  %vm1398_vm10 = vweird.f32 %v3603_v60 }
  0xf8   : >> { %v1310_v52 = vsel %vm1309_vm5, %v2715_v20, %v1306_v47  ;;  %v1409_v2 = vsub.f32 1.0, %v1408_v29  ;;  %v1416_v47 = vand.u32 2147483647, %v3561_v17  ;;  %vm3647_vm9 = vcmp.eq.f32.partialorder %v1401_v38, 8.507059e+37  ;;  %vm3666_vm11 = vmor %vm1397_vm6, %vm1398_vm10 }
  0xf9   : >> { %v1315_v34 = vsel %vm3596_vm15, %v1314_v0, %v1310_v52  ;;  %v1325_v54 = vsel %vm1324_vm7, %v2717_v25, %v1321_v35  ;;  %v1395_v11 = vmul.f32 %v3603_v60, %v1394_v24  ;;  %v3629_v3 = vpop.eup %2724  ;;  %v1418_v0 = vand.u32 2147483648, %v3561_v17  ;;  %v3654_v35 = vpop.f32.mrf.mxu3 }
  0xfa   : >> { %v3632_v20 = vmul.f32 %v1315_v34, %v3389_v28  ;;  %v1330_v61 = vsel %vm3608_vm4, %v1329_v1, %v1325_v54  ;;  %v1423_v25 = vmul.f32 %v3629_v3, %v3594_v56  ;;  %v2727_v19 = vpop.eup %2726  ;;  %v1404_v53 = vor.u32 1.1754944e-38, %v1403_v50 }
  0xfb   : >> { %v3639_v14 = vmul.f32 %v1330_v61, %v3396_v41  ;;  %v1410_v29 = vmul.f32 %v3606_v21, %v1409_v2  ;;  %v3652_v41 = vpop.f32.mrf.mxu2  ;;  %v3656_v24 = vpop.eup %2728  ;;  %v1396_v34 = vadd.f32 %v3603_v60, %v1395_v11  ;;  %2730 = vrcp.f32 %v3627_v31 }
  0xfc   : >> { %5380 = vst [vmem:[#allocation19_spill] sm:$0xff] %v3632_v20  ;;  %v1424_v54 = vsub.f32 1.0, %v1423_v25  ;;  %vm1413_vm12 = vweird.f32 %v3606_v21  ;;  %vm3671_vm13 = vcmp.eq.f32.partialorder %v1416_v47, 8.507059e+37  ;;  %v1431_v50 = vand.u32 2147483647, %v3594_v56  ;;  %v3678_v61 = vpop.f32.mrf.mxu0  ;;  %v3680_v25 = vpop.f32.mrf.mxu1 }
  0xfd   : >> { %5381 = vst [vmem:[#allocation20_spill] sm:$0xff] %v3639_v14  ;;  %v1438_v11 = vmul.f32 %v3656_v24, %v3601_v45  ;;  %v1419_v46 = vor.u32 1.1754944e-38, %v1418_v0  ;;  %v1433_v28 = vand.u32 2147483648, %v3594_v56  ;;  %v1448_v4 = vand.u32 2147483648, %v3601_v45  ;;  %vm3695_vm15 = vmor %vm1412_vm8, %vm1413_vm12 }
  0xfe   : >> { %v1425_v52 = vmul.f32 %v3629_v3, %v1424_v54  ;;  %v1411_v47 = vadd.f32 %v3606_v21, %v1410_v29  ;;  %vm1428_vm14 = vweird.f32 %v3629_v3  ;;  %v1446_v6 = vand.u32 2147483647, %v3601_v45 }
  0xff   : >> { %v1439_v5 = vsub.f32 1.0, %v1438_v11  ;;  %v1400_v7 = vsel %vm3666_vm11, %v3603_v60, %v1396_v34  ;;  %v3700_v29 = vadd.f32 1.0, %v2727_v19  ;;  %2732 = vpow2.f32 %v3566_v16 }
 0x100   : >> { %v1426_v54 = vadd.f32 %v3629_v3, %v1425_v52  ;;  %vm1427_vm1 = vweird.f32 %v3594_v56  ;;  %vm3704_vm2 = vcmp.eq.f32.partialorder %v1431_v50, 8.507059e+37  ;;  %2734 = vpow2.f32 %v3569_v51 }
 0x101   : >> { %v1440_v60 = vmul.f32 %v3656_v24, %v1439_v5  ;;  %v2731_v17 = vpop.eup %2730  ;;  %v1434_v34 = vor.u32 1.1754944e-38, %v1433_v28  ;;  %vm1442_vm3 = vweird.f32 %v3601_v45  ;;  %v1449_v2 = vor.u32 1.1754944e-38, %v1448_v4  ;;  %vm3719_vm4 = vmor %vm1427_vm1, %vm1428_vm14  ;;  %v3740_v52 = vpop.f32.mrf.mxu3 }
 0x102   : >> { %2736 = vrcp.f32 %v3700_v29  ;;  %v1405_v16 = vsel %vm3647_vm9, %v1404_v53, %v1400_v7  ;;  %v1415_v56 = vsel %vm3695_vm15, %v3606_v21, %v1411_v47  ;;  %vm3723_vm5 = vcmp.eq.f32.partialorder %v1446_v6, 8.507059e+37 }
 0x103   : >> { %v1513_v4 = vmul.f32 %v2731_v17, %v3627_v31  ;;  %v2543_v19 = vmul.f32 -1.442695, %v3652_v41  ;;  %v1430_v7 = vsel %vm3719_vm4, %v3629_v3, %v1426_v54  ;;  %vm1443_vm6 = vweird.f32 %v3656_v24  ;;  %v3738_v53 = vpop.f32.mrf.mxu2 }
 0x104   : >> { %v1523_v21 = vand.u32 2147483648, %v3627_v31  ;;  %2738 = vpow2.f32 %v3578_v22  ;;  %v1441_v28 = vadd.f32 %v3656_v24, %v1440_v60  ;;  %v2544_v1 = vmul.f32 -1.442695, %v3654_v35  ;;  %v3751_v60 = vpop.f32.mrf.mxu0  ;;  %v3753_v5 = vpop.f32.mrf.mxu1  ;;  %vm3761_vm10 = vmor %vm1442_vm3, %vm1443_vm6 }
 0x105   : >> { %v1514_v6 = vsub.f32 1.0, %v1513_v4  ;;  %2740 = vpow2.f32 %v3589_v63  ;;  %v2733_v50 = vpop.eup %2732  ;;  %v3743_v3 = vmul.f32 %v1405_v16, %v3409_v30  ;;  %v1420_v47 = vsel %vm3671_vm13, %v1419_v46, %v1415_v56 }
 0x106   : >> { %vm1517_vm7 = vweird.f32 %v3627_v31  ;;  %v1521_v22 = vand.u32 2147483647, %v3627_v31  ;;  %v2735_v0 = vpop.eup %2734  ;;  %vm1518_vm8 = vweird.f32 %v2731_v17  ;;  %v3749_v63 = vadd.f32 1.0, %v2733_v50 }
 0x107   : >> { %v1515_v54 = vmul.f32 %v2731_v17, %v1514_v6  ;;  %2742 = vpow2.f32 %v2543_v19  ;;  %v1435_v30 = vsel %vm3704_vm2, %v1434_v34, %v1430_v7  ;;  %v1524_v46 = vor.u32 1.1754944e-38, %v1523_v21  ;;  %vm1519_vm9 = vmor %vm1517_vm7, %vm1518_vm8 }
 0x108   : >> { %v2737_v4 = vpop.eup %2736  ;;  %v3765_v16 = vadd.f32 1.0, %v2735_v0  ;;  %2744 = vpow2.f32 %v2544_v1  ;;  %v1445_v56 = vsel %vm3761_vm10, %v3656_v24, %v1441_v28  ;;  %v1536_v45 = vand.u32 2147483647, %v3700_v29 }
 0x109   : >> { %v1516_v19 = vadd.f32 %v2731_v17, %v1515_v54  ;;  %v1528_v11 = vmul.f32 %v2737_v4, %v3700_v29  ;;  %2746 = vrcp.f32 %v3749_v63  ;;  %v1538_v7 = vand.u32 2147483648, %v3700_v29 }
 0x10a   : >> { %v2739_v34 = vpop.eup %2738  ;;  %2748 = vrcp.f32 %v3765_v16  ;;  %v2549_v21 = vmul.f32 -1.442695, %v3678_v61  ;;  %v3780_v24 = vmul.f32 %v1420_v47, %v3423_v59  ;;  %vm1522_vm11 = vcmp.eq.f32.partialorder %v1521_v22, 8.507059e+37 }
 0x10b   : >> { %v2741_v6 = vpop.eup %2740  ;;  %v1520_v28 = vsel %vm1519_vm9, %v2731_v17, %v1516_v19  ;;  %v1529_v1 = vsub.f32 1.0, %v1528_v11  ;;  %v3783_v50 = vmul.f32 %v1435_v30, %v3470_v37  ;;  %v1450_v31 = vsel %vm3723_vm5, %v1449_v2, %v1445_v56  ;;  %v3793_v17 = vpop.f32.mrf.mxu2 }
 0x10c   : >> { %v1525_v0 = vsel %vm1522_vm11, %v1524_v46, %v1520_v28  ;;  %vm1532_vm12 = vweird.f32 %v3700_v29  ;;  %vm1533_vm13 = vweird.f32 %v2737_v4  ;;  %v3791_v59 = vadd.f32 1.0, %v2739_v34  ;;  %v3807_v56 = vpop.f32.mrf.mxu3  ;;  %v391_v19 = vpop.f32.mrf.mxu0 }
 0x10d   : >> { %v2743_v54 = vpop.eup %2742  ;;  %v3789_v38 = vmul.f32 %v1525_v0, %v3482_v58  ;;  %v1530_v8 = vmul.f32 %v2737_v4, %v1529_v1  ;;  %vm3795_vm14 = vcmp.eq.f32.partialorder %v1536_v45, 8.507059e+37  ;;  %v1539_v51 = vor.u32 1.1754944e-38, %v1538_v7  ;;  %vm1534_vm15 = vmor %vm1532_vm12, %vm1533_vm13 }
 0x10e   : >> { %v2745_v47 = vpop.eup %2744  ;;  %v3799_v2 = vadd.f32 1.0, %v2741_v6  ;;  %2750 = vpow2.f32 %v2549_v21  ;;  %v3802_v30 = vmul.f32 %v1450_v31, %v3476_v62  ;;  %v3813_v45 = vadd.f32 1.0, %v2743_v54 }
 0x10f   : >> { %v2747_v22 = vpop.eup %2746  ;;  %v1531_v46 = vadd.f32 %v2737_v4, %v1530_v8  ;;  %2752 = vrcp.f32 %v3791_v59  ;;  %v3816_v62 = vmul.f32 -1.442695, %v3680_v25  ;;  %v3819_v7 = vmul.f32 -1.442695, %v3738_v53  ;;  %v424_v8 = vpop.f32.mrf.mxu1 }
 0x110   : >> { %5400 = vst [vmem:[#allocation21_spill] sm:$0xff] %v3802_v30  ;;  %v2749_v11 = vpop.eup %2748  ;;  %v1543_v34 = vmul.f32 %v2747_v22, %v3749_v63  ;;  %v1551_v6 = vand.u32 2147483647, %v3749_v63  ;;  %2754 = vrcp.f32 %v3799_v2  ;;  %v1553_v31 = vand.u32 2147483648, %v3749_v63 }
 0x111   : >> { %v1535_v21 = vsel %vm1534_vm15, %v2737_v4, %v1531_v46  ;;  %v1558_v28 = vmul.f32 %v2749_v11, %v3765_v16  ;;  %v1566_v0 = vand.u32 2147483647, %v3765_v16  ;;  %v1568_v4 = vand.u32 2147483648, %v3765_v16 }
 0x112   : >> { %v1540_v29 = vsel %vm3795_vm14, %v1539_v51, %v1535_v21  ;;  %v1544_v1 = vsub.f32 1.0, %v1543_v34  ;;  %v3832_v46 = vadd.f32 1.0, %v2745_v47  ;;  %vm1547_vm1 = vweird.f32 %v3749_v63 }
 0x113   : >> { %v3829_v54 = vmul.f32 %v1540_v29, %v3508_v36  ;;  %v1559_v19 = vsub.f32 1.0, %v1558_v28  ;;  %vm1548_vm2 = vweird.f32 %v2747_v22  ;;  %2756 = vrcp.f32 %v3813_v45  ;;  %v457_v36 = vpop.f32.mrf.mxu2 }
 0x114   : >> { %v2751_v8 = vpop.eup %2750  ;;  %v1545_v58 = vmul.f32 %v2747_v22, %v1544_v1  ;;  %vm1562_vm3 = vweird.f32 %v3765_v16  ;;  %vm1563_vm4 = vweird.f32 %v2749_v11  ;;  %vm1552_vm5 = vcmp.eq.f32.partialorder %v1551_v6, 8.507059e+37  ;;  %vm1549_vm6 = vmor %vm1547_vm1, %vm1548_vm2  ;;  %v490_v51 = vpop.f32.mrf.mxu3 }
 0x115   : >> { %v3836_v37 = vpop.eup %2752  ;;  %v1560_v34 = vmul.f32 %v2749_v11, %v1559_v19  ;;  %v1554_v47 = vor.u32 1.1754944e-38, %v1553_v31  ;;  %vm1567_vm7 = vcmp.eq.f32.partialorder %v1566_v0, 8.507059e+37  ;;  %v1569_v1 = vor.u32 1.1754944e-38, %v1568_v4  ;;  %vm1564_vm8 = vmor %vm1562_vm3, %vm1563_vm4 }
 0x116   : >> { %v1546_v21 = vadd.f32 %v2747_v22, %v1545_v58  ;;  %v1633_v28 = vmul.f32 %v3836_v37, %v3791_v59  ;;  %v3843_v63 = vpop.eup %2754  ;;  %2758 = vrcp.f32 %v3832_v46  ;;  %v1641_v58 = vand.u32 2147483647, %v3791_v59 }
 0x117   : >> { %v1561_v29 = vadd.f32 %v2749_v11, %v1560_v34  ;;  %v1648_v6 = vmul.f32 %v3843_v63, %v3799_v2  ;;  %vm1637_vm10 = vweird.f32 %v3791_v59  ;;  %v1643_v0 = vand.u32 2147483648, %v3791_v59 }
 0x118   : >> { %v1550_v19 = vsel %vm1549_vm6, %v2747_v22, %v1546_v21  ;;  %v1634_v36 = vsub.f32 1.0, %v1633_v28  ;;  %v1656_v34 = vand.u32 2147483647, %v3799_v2  ;;  %vm1638_vm9 = vweird.f32 %v3836_v37 }
 0x119   : >> { %v1555_v31 = vsel %vm1552_vm5, %v1554_v47, %v1550_v19  ;;  %v1565_v10 = vsel %vm1564_vm8, %v2749_v11, %v1561_v29  ;;  %v3853_v4 = vpop.eup %2756  ;;  %v1649_v16 = vsub.f32 1.0, %v1648_v6  ;;  %v1658_v11 = vand.u32 2147483648, %v3799_v2  ;;  %vm3894_vm15 = vmor %vm1637_vm10, %vm1638_vm9 }
 0x11a   : >> { %v3856_v51 = vmul.f32 %v1555_v31, %v3545_v15  ;;  %v1570_v22 = vsel %vm1567_vm7, %v1569_v1, %v1565_v10  ;;  %v1635_v28 = vmul.f32 %v3836_v37, %v1634_v36  ;;  %v1663_v47 = vmul.f32 %v3853_v4, %v3813_v45 }
 0x11b   : >> { %v3860_v21 = vmul.f32 %v1570_v22, %v3547_v42  ;;  %vm3869_vm11 = vcmp.eq.f32.partialorder %v1641_v58, 8.507059e+37  ;;  %v1650_v15 = vmul.f32 %v3843_v63, %v1649_v16  ;;  %v1671_v42 = vand.u32 2147483647, %v3813_v45 }
 0x11c   : >> { %v3875_v1 = vpop.eup %2758  ;;  %v1664_v36 = vsub.f32 1.0, %v1663_v47  ;;  %v1673_v6 = vand.u32 2147483648, %v3813_v45  ;;  %v3880_v31 = vadd.f32 1.0, %v2751_v8  ;;  %v1644_v22 = vor.u32 1.1754944e-38, %v1643_v0 }
 0x11d   : >> { %vm1652_vm12 = vweird.f32 %v3799_v2  ;;  %vm1653_vm13 = vweird.f32 %v3843_v63  ;;  %v1678_v58 = vmul.f32 %v3875_v1, %v3832_v46  ;;  %v1636_v16 = vadd.f32 %v3836_v37, %v1635_v28 }
 0x11e   : >> { %v1665_v29 = vmul.f32 %v3853_v4, %v1664_v36  ;;  %vm1667_vm14 = vweird.f32 %v3813_v45  ;;  %2760 = vrcp.f32 %v3880_v31  ;;  %v1651_v2 = vadd.f32 %v3843_v63, %v1650_v15  ;;  %vm3903_vm2 = vmor %vm1652_vm12, %vm1653_vm13  ;;  %v3946_v36 = vpop.f32.mrf.mxu0 }
 0x11f   : >> { %vm3899_vm1 = vcmp.eq.f32.partialorder %v1656_v34, 8.507059e+37  ;;  %v1659_v28 = vor.u32 1.1754944e-38, %v1658_v11  ;;  %v1679_v47 = vsub.f32 1.0, %v1678_v58  ;;  %vm1668_vm3 = vweird.f32 %v3853_v4 }
 0x120   : >> { %v1666_v19 = vadd.f32 %v3853_v4, %v1665_v29  ;;  %vm3909_vm4 = vcmp.eq.f32.partialorder %v1671_v42, 8.507059e+37  ;;  %v1674_v9 = vor.u32 1.1754944e-38, %v1673_v6  ;;  %v1686_v15 = vand.u32 2147483647, %v3832_v46  ;;  %vm3928_vm6 = vmor %vm1667_vm14, %vm1668_vm3 }
 0x121   : >> { %v1680_v34 = vmul.f32 %v3875_v1, %v1679_v47  ;;  %2762 = vpow2.f32 %v3816_v62  ;;  %v2552_v11 = vmul.f32 -1.442695, %v3740_v52  ;;  %v1640_v58 = vsel %vm3894_vm15, %v3836_v37, %v1636_v16 }
 0x122   : >> { %vm1682_vm5 = vweird.f32 %v3832_v46  ;;  %v1688_v29 = vand.u32 2147483648, %v3832_v46  ;;  %2764 = vpow2.f32 %v3819_v7  ;;  %v1655_v42 = vsel %vm3903_vm2, %v3843_v63, %v1651_v2 }
 0x123   : >> { %vm1683_vm7 = vweird.f32 %v3875_v1  ;;  %2766 = vpow2.f32 %v2552_v11  ;;  %v2557_v37 = vmul.f32 -1.442695, %v3751_v60  ;;  %v1670_v7 = vsel %vm3928_vm6, %v3853_v4, %v1666_v19 }
 0x124   : >> { %v2761_v6 = vpop.eup %2760  ;;  %v1681_v16 = vadd.f32 %v3875_v1, %v1680_v34  ;;  %v2558_v63 = vmul.f32 -1.442695, %v3753_v5  ;;  %v2559_v45 = vmul.f32 -1.442695, %v3793_v17  ;;  %vm3940_vm8 = vcmp.eq.f32.partialorder %v1686_v15, 8.507059e+37  ;;  %vm3958_vm10 = vmor %vm1682_vm5, %vm1683_vm7 }
 0x125   : >> { %v1753_v2 = vmul.f32 %v2761_v6, %v3880_v31  ;;  %2768 = vpow2.f32 %v2557_v37  ;;  %v2560_v47 = vmul.f32 -1.442695, %v3807_v56  ;;  %v1645_v4 = vsel %vm3869_vm11, %v1644_v22, %v1640_v58 }
 0x126   : >> { %v1660_v19 = vsel %vm3899_vm1, %v1659_v28, %v1655_v42  ;;  %v1689_v34 = vor.u32 1.1754944e-38, %v1688_v29  ;;  %2770 = vpow2.f32 %v2558_v63  ;;  %v1675_v15 = vsel %vm3909_vm4, %v1674_v9, %v1670_v7 }
 0x127   : >> { %v2763_v11 = vpop.eup %2762  ;;  %v1754_v37 = vsub.f32 1.0, %v1753_v2  ;;  %v1761_v10 = vand.u32 2147483647, %v3880_v31  ;;  %v1763_v22 = vand.u32 2147483648, %v3880_v31  ;;  %v1685_v28 = vsel %vm3958_vm10, %v3875_v1, %v1681_v16 }
 0x128   : >> { %v2765_v0 = vpop.eup %2764  ;;  %v3967_v59 = vadd.f32 1.0, %v2763_v11  ;;  %2772 = vpow2.f32 %v2559_v45  ;;  %v2497_v9 = vmul.f32 -1.442695, %v3946_v36  ;;  %vm1758_vm9 = vweird.f32 %v2761_v6  ;;  %v3981_v45 = vpop.f32.mrf.mxu1 }
 0x129   : >> { %v2767_v46 = vpop.eup %2766  ;;  %v1755_v58 = vmul.f32 %v2761_v6, %v1754_v37  ;;  %v3970_v29 = vadd.f32 1.0, %v2765_v0  ;;  %2774 = vpow2.f32 %v2560_v47  ;;  %v3973_v42 = vmul.f32 %v1645_v4, %v3555_v27 }
 0x12a   : >> { %v3976_v7 = vmul.f32 %v1660_v19, %v3571_v39  ;;  %vm1757_vm11 = vweird.f32 %v3880_v31  ;;  %2776 = vrcp.f32 %v3967_v59  ;;  %vm1762_vm12 = vcmp.eq.f32.partialorder %v1761_v10, 8.507059e+37 }
 0x12b   : >> { %v2769_v1 = vpop.eup %2768  ;;  %v1756_v16 = vadd.f32 %v2761_v6, %v1755_v58  ;;  %v1764_v63 = vor.u32 1.1754944e-38, %v1763_v22  ;;  %2778 = vrcp.f32 %v3970_v29  ;;  %v3984_v47 = vmul.f32 %v1675_v15, %v3652_v41  ;;  %vm1759_vm13 = vmor %vm1757_vm11, %vm1758_vm9 }
 0x12c   : >> { %v2771_v2 = vpop.eup %2770  ;;  %v1690_v27 = vsel %vm3940_vm8, %v1689_v34, %v1685_v28  ;;  %v3989_v39 = vadd.f32 1.0, %v2767_v46  ;;  %2780 = vpow2.f32 %v2497_v9  ;;  %v1776_v4 = vand.u32 2147483647, %v3967_v59 }
 0x12d   : >> { %v1760_v31 = vsel %vm1759_vm13, %v2761_v6, %v1756_v16  ;;  %v3992_v19 = vadd.f32 1.0, %v2769_v1  ;;  %v3994_v11 = vadd.f32 1.0, %v2771_v2  ;;  %v1778_v41 = vand.u32 2147483648, %v3967_v59 }
 0x12e   : >> { %v2773_v62 = vpop.eup %2772  ;;  %v1765_v37 = vsel %vm1762_vm12, %v1764_v63, %v1760_v31  ;;  %2782 = vrcp.f32 %v3989_v39  ;;  %v3999_v8 = vmul.f32 -1.442695, %v3981_v45  ;;  %v1791_v6 = vand.u32 2147483647, %v3970_v29 }
 0x12f   : >> { %v2775_v34 = vpop.eup %2774  ;;  %v4002_v15 = vmul.f32 %v1765_v37, %v3678_v61  ;;  %v1793_v10 = vand.u32 2147483648, %v3970_v29  ;;  %2784 = vrcp.f32 %v3992_v19  ;;  %v4008_v0 = vmul.f32 %v1690_v27, %v3654_v35 }
 0x130   : >> { %v2777_v22 = vpop.eup %2776  ;;  %vm1772_vm14 = vweird.f32 %v3967_v59  ;;  %vm1787_vm15 = vweird.f32 %v3970_v29  ;;  %2786 = vrcp.f32 %v3994_v11  ;;  %vm4016_vm1 = vcmp.eq.f32.partialorder %v1776_v4, 8.507059e+37 }
 0x131   : >> { %v2779_v28 = vpop.eup %2778  ;;  %v1768_v9 = vmul.f32 %v2777_v22, %v3967_v59  ;;  %v1806_v58 = vand.u32 2147483647, %v3989_v39  ;;  %v1808_v35 = vand.u32 2147483648, %v3989_v39  ;;  %v1779_v16 = vor.u32 1.1754944e-38, %v1778_v41  ;;  %v4129_v59 = vpop.f32.mrf.mxu0 }
 0x132   : >> { %v4022_v1 = vpop.eup %2780  ;;  %v1783_v63 = vmul.f32 %v2779_v28, %v3970_v29  ;;  %v1881_v2 = vand.u32 2147483647, %v3992_v19  ;;  %v1883_v27 = vand.u32 2147483648, %v3992_v19  ;;  %vm4027_vm2 = vcmp.eq.f32.partialorder %v1791_v6, 8.507059e+37 }
 0x133   : >> { %v1769_v31 = vsub.f32 1.0, %v1768_v9  ;;  %v1794_v4 = vor.u32 1.1754944e-38, %v1793_v10  ;;  %vm1802_vm3 = vweird.f32 %v3989_v39  ;;  %vm1773_vm4 = vweird.f32 %v2777_v22 }
 0x134   : >> { %v2783_v61 = vpop.eup %2782  ;;  %v1784_v57 = vsub.f32 1.0, %v1783_v63  ;;  %vm1877_vm5 = vweird.f32 %v3992_v19  ;;  %v4033_v41 = vadd.f32 1.0, %v2773_v62  ;;  %vm1788_vm6 = vweird.f32 %v2779_v28  ;;  %vm1774_vm10 = vmor %vm1772_vm14, %vm1773_vm4 }
 0x135   : >> { %v2785_v44 = vpop.eup %2784  ;;  %v1770_v43 = vmul.f32 %v2777_v22, %v1769_v31  ;;  %v1798_v49 = vmul.f32 %v2783_v61, %v3989_v39  ;;  %vm4036_vm7 = vcmp.eq.f32.partialorder %v1806_v58, 8.507059e+37  ;;  %v1809_v9 = vor.u32 1.1754944e-38, %v1808_v35  ;;  %vm1789_vm11 = vmor %vm1787_vm15, %vm1788_vm6 }
 0x136   : >> { %v4040_v10 = vpop.eup %2786  ;;  %v1785_v18 = vmul.f32 %v2779_v28, %v1784_v57  ;;  %v1873_v14 = vmul.f32 %v2785_v44, %v3992_v19  ;;  %vm4043_vm8 = vcmp.eq.f32.partialorder %v1881_v2, 8.507059e+37  ;;  %v1884_v62 = vor.u32 1.1754944e-38, %v1883_v27 }
 0x137   : >> { %v1771_v55 = vadd.f32 %v2777_v22, %v1770_v43  ;;  %v1799_v31 = vsub.f32 1.0, %v1798_v49  ;;  %v1888_v20 = vmul.f32 %v4040_v10, %v3994_v11  ;;  %v4049_v58 = vadd.f32 1.0, %v2775_v34 }
 0x138   : >> { %v1786_v35 = vadd.f32 %v2779_v28, %v1785_v18  ;;  %v1874_v57 = vsub.f32 1.0, %v1873_v14  ;;  %vm1878_vm9 = vweird.f32 %v2785_v44  ;;  %2788 = vrcp.f32 %v4033_v41 }
 0x139   : >> { %v1775_v2 = vsel %vm1774_vm10, %v2777_v22, %v1771_v55  ;;  %v1800_v43 = vmul.f32 %v2783_v61, %v1799_v31  ;;  %vm1803_vm12 = vweird.f32 %v2783_v61  ;;  %v1889_v49 = vsub.f32 1.0, %v1888_v20  ;;  %vm4068_vm14 = vmor %vm1877_vm5, %vm1878_vm9 }
 0x13a   : >> { %v1780_v34 = vsel %vm4016_vm1, %v1779_v16, %v1775_v2  ;;  %v1790_v27 = vsel %vm1789_vm11, %v2779_v28, %v1786_v35  ;;  %v1875_v30 = vmul.f32 %v2785_v44, %v1874_v57  ;;  %vm1892_vm13 = vweird.f32 %v3994_v11  ;;  %vm1804_vm15 = vmor %vm1802_vm3, %vm1803_vm12  ;;  %v4080_v28 = vpop.f32.mrf.mxu2 }
 0x13b   : >> { %v4062_v18 = vmul.f32 %v1780_v34, %v3680_v25  ;;  %v1795_v55 = vsel %vm4027_vm2, %v1794_v4, %v1790_v27  ;;  %v1801_v14 = vadd.f32 %v2783_v61, %v1800_v43  ;;  %v1890_v20 = vmul.f32 %v4040_v10, %v1889_v49 }
 0x13c   : >> { %v4074_v29 = vmul.f32 %v1795_v55, %v3738_v53  ;;  %v1876_v25 = vadd.f32 %v2785_v44, %v1875_v30  ;;  %vm1893_vm1 = vweird.f32 %v4040_v10  ;;  %v1896_v22 = vand.u32 2147483647, %v3994_v11  ;;  %v4086_v53 = vpop.f32.mrf.mxu3 }
 0x13d   : >> { %v1805_v46 = vsel %vm1804_vm15, %v2783_v61, %v1801_v14  ;;  %v1898_v16 = vand.u32 2147483648, %v3994_v11  ;;  %2790 = vrcp.f32 %v4049_v58  ;;  %v1891_v31 = vadd.f32 %v4040_v10, %v1890_v20  ;;  %vm4104_vm2 = vmor %vm1892_vm13, %vm1893_vm1  ;;  %v4131_v20 = vpop.f32.mrf.mxu1 }
 0x13e   : >> { %v2789_v37 = vpop.eup %2788  ;;  %v1810_v39 = vsel %vm4036_vm7, %v1809_v9, %v1805_v46  ;;  %v1880_v4 = vsel %vm4068_vm14, %v2785_v44, %v1876_v25  ;;  %v2499_v44 = vmul.f32 -1.442695, %v4080_v28  ;;  %vm4114_vm3 = vcmp.eq.f32.partialorder %v1896_v22, 8.507059e+37 }
 0x13f   : >> { %v4096_v61 = vmul.f32 %v1810_v39, %v3740_v52  ;;  %v1885_v35 = vsel %vm4043_vm8, %v1884_v62, %v1880_v4  ;;  %v1903_v6 = vmul.f32 %v2789_v37, %v4033_v41  ;;  %v2500_v52 = vmul.f32 -1.442695, %v4086_v53 }
 0x140   : >> { %v2056_v9 = vmul.f32 %v1885_v35, %v3751_v60  ;;  %v1899_v11 = vor.u32 1.1754944e-38, %v1898_v16  ;;  %v1895_v49 = vsel %vm4104_vm2, %v4040_v10, %v1891_v31  ;;  %v4122_v34 = vadd.f32 1.0, %v4022_v1 }
 0x141   : >> { %v1904_v2 = vsub.f32 1.0, %v1903_v6  ;;  %2792 = vpow2.f32 %v3999_v8  ;;  %v1911_v55 = vand.u32 2147483647, %v4033_v41  ;;  %v1913_v14 = vand.u32 2147483648, %v4033_v41 }
 0x142   : >> { %v2096_v43 = vpack.c.bf16 %v2056_v9, %v2056_v9  ;;  %2794 = vpow2.f32 %v2499_v44  ;;  %vm1908_vm4 = vweird.f32 %v2789_v37  ;;  %v1900_v8 = vsel %vm4114_vm3, %v1899_v11, %v1895_v49  ;;  %v4150_v35 = vpop.f32.mrf.mxu2 }
 0x143   : >> { %v4125_v60 = vpop.eup %2790  ;;  %v1905_v27 = vmul.f32 %v2789_v37, %v1904_v2  ;;  %2796 = vrcp.f32 %v4122_v34  ;;  %vm1907_vm5 = vweird.f32 %v4033_v41  ;;  %v2505_v22 = vmul.f32 -1.442695, %v4129_v59 }
 0x144   : >> { %v1918_v10 = vmul.f32 %v4125_v60, %v4049_v58  ;;  %2798 = vpow2.f32 %v2500_v52  ;;  %v2506_v46 = vmul.f32 -1.442695, %v4131_v20  ;;  %v2114_v16 = vsel %vm332_vm0, %v2096_v43, 0  ;;  %vm4142_vm6 = vmor %vm1907_vm5, %vm1908_vm4  ;;  %v4198_v39 = vpop.f32.mrf.mxu3 }
 0x145   : >> { %v1906_v1 = vadd.f32 %v2789_v37, %v1905_v27  ;;  %vm4146_vm7 = vcmp.eq.f32.partialorder %v1911_v55, 8.507059e+37  ;;  %v1914_v31 = vor.u32 1.1754944e-38, %v1913_v14  ;;  %2140 = vmatpush.bf16.msra.mxu0 %v2114_v16  ;;  %v1926_v44 = vand.u32 2147483647, %v4049_v58 }
 0x146   : >> { %v1919_v25 = vsub.f32 1.0, %v1918_v10  ;;  %2800 = vpow2.f32 %v2505_v22  ;;  %v4157_v52 = vmul.f32 %v1900_v8, %v3753_v5  ;;  %vm1923_vm8 = vweird.f32 %v4125_v60 }
 0x147   : >> { %v2793_v41 = vpop.eup %2792  ;;  %v1910_v57 = vsel %vm4142_vm6, %v2789_v37, %v1906_v1  ;;  %2802 = vpow2.f32 %v2506_v46  ;;  %v1928_v37 = vand.u32 2147483648, %v4049_v58  ;;  %v2507_v49 = vmul.f32 -1.442695, %v4150_v35 }
 0x148   : >> { %v1920_v6 = vmul.f32 %v4125_v60, %v1919_v25  ;;  %v2795_v9 = vpop.eup %2794  ;;  %v4160_v62 = vadd.f32 1.0, %v2793_v41  ;;  %v1915_v5 = vsel %vm4146_vm7, %v1914_v31, %v1910_v57  ;;  %vm1922_vm10 = vweird.f32 %v4049_v58  ;;  %v4206_v57 = vpop.f32.mrf.mxu0 }
 0x149   : >> { %v4162_v11 = vpop.eup %2796  ;;  %v4166_v43 = vadd.f32 1.0, %v2795_v9  ;;  %v5435_v14 = vpack.c.bf16 %v4002_v15, %v3973_v42  ;;  %vm4178_vm9 = vmor %vm1922_vm10, %vm1923_vm8  ;;  %vm4182_vm11 = vcmp.eq.f32.partialorder %v1926_v44, 8.507059e+37  ;;  %v981_v1 = vand.u32 2147483647, %v4122_v34 }
 0x14a   : >> { %v1921_v2 = vadd.f32 %v4125_v60, %v1920_v6  ;;  %v2799_v27 = vpop.eup %2798  ;;  %v973_v55 = vmul.f32 %v4162_v11, %v4122_v34  ;;  %2804 = vrcp.f32 %v4160_v62  ;;  %v983_v58 = vand.u32 2147483648, %v4122_v34  ;;  %v4208_v6 = vpop.f32.mrf.mxu1 }
 0x14b   : >> { %2141 = vmatpush.bf16.msra.mxu0 %v5435_v14  ;;  %v2097_v25 = vpack.c.bf16 %v4157_v52, %v4157_v52  ;;  %2806 = vrcp.f32 %v4166_v43  ;;  %v4195_v46 = vmul.f32 %v1915_v5, %v3793_v17  ;;  %v1929_v16 = vor.u32 1.1754944e-38, %v1928_v37 }
 0x14c   : >> { %v1925_v42 = vsel %vm4178_vm9, %v4125_v60, %v1921_v2  ;;  %v974_v15 = vsub.f32 1.0, %v973_v55  ;;  %v2801_v22 = vpop.eup %2800  ;;  %vm977_vm12 = vweird.f32 %v4122_v34  ;;  %2808 = vpow2.f32 %v2507_v49 }
 0x14d   : >> { %v2803_v4 = vpop.eup %2802  ;;  %vm978_vm13 = vweird.f32 %v4162_v11  ;;  %v4202_v41 = vadd.f32 1.0, %v2799_v27  ;;  %v4204_v60 = vadd.f32 1.0, %v2801_v22  ;;  %v5440_v17 = vpack.c.bf16 %v3789_v38, %v3743_v3 }
 0x14e   : >> { %v975_v31 = vmul.f32 %v4162_v11, %v974_v15  ;;  %v1930_v44 = vsel %vm4182_vm11, %v1929_v16, %v1925_v42  ;;  %vm4215_vm14 = vcmp.eq.f32.partialorder %v981_v1, 8.507059e+37  ;;  %v984_v2 = vor.u32 1.1754944e-38, %v983_v58  ;;  %vm4230_vm15 = vmor %vm977_vm12, %vm978_vm13 }
 0x14f   : >> { %2142 = vmatpush.bf16.msra.mxu0 %v5440_v17  ;;  %v996_v37 = vand.u32 2147483647, %v4160_v62  ;;  %v998_v5 = vand.u32 2147483648, %v4160_v62  ;;  %2810 = vrcp.f32 %v4202_v41  ;;  %v2508_v3 = vmul.f32 -1.442695, %v4198_v39 }
 0x150   : >> { %v4220_v49 = vpop.eup %2804  ;;  %v976_v27 = vadd.f32 %v4162_v11, %v975_v31  ;;  %v4236_v14 = vadd.f32 1.0, %v2803_v4  ;;  %v4239_v10 = vmul.f32 -1.442695, %v4206_v57  ;;  %v4242_v8 = vmul.f32 -1.442695, %v4208_v6 }
 0x151   : >> { %v988_v55 = vmul.f32 %v4220_v49, %v4160_v62  ;;  %v4244_v1 = vpop.eup %2806  ;;  %v4249_v58 = vmul.f32 %v1930_v44, %v3807_v56  ;;  %v1013_v42 = vand.u32 2147483648, %v4166_v43  ;;  %2812 = vrcp.f32 %v4204_v60 }
 0x152   : >> { %v5445_v15 = vpack.c.bf16 %v3524_v32, %v3497_v33  ;;  %v2809_v22 = vpop.eup %2808  ;;  %vm992_vm1 = vweird.f32 %v4160_v62  ;;  %vm4257_vm2 = vcmp.eq.f32.partialorder %v996_v37, 8.507059e+37  ;;  %v1003_v56 = vmul.f32 %v4244_v1, %v4166_v43 }
 0x153   : >> { %v989_v16 = vsub.f32 1.0, %v988_v55  ;;  %v980_v31 = vsel %vm4230_vm15, %v4162_v11, %v976_v27  ;;  %vm993_vm3 = vweird.f32 %v4220_v49  ;;  %v999_v17 = vor.u32 1.1754944e-38, %v998_v5 }
 0x154   : >> { %2143 = vmatpush.bf16.msra.mxu0 %v5445_v15  ;;  %2814 = vpow2.f32 %v2508_v3  ;;  %v1004_v32 = vsub.f32 1.0, %v1003_v56  ;;  %v1011_v44 = vand.u32 2147483647, %v4166_v43  ;;  %vm1007_vm4 = vweird.f32 %v4166_v43  ;;  %vm4290_vm5 = vmor %vm992_vm1, %vm993_vm3  ;;  %v4355_v43 = vpop.f32.mrf.mxu2 }
 0x155   : >> { %v990_v33 = vmul.f32 %v4220_v49, %v989_v16  ;;  %2816 = vrcp.f32 %v4236_v14  ;;  %v4270_v37 = vpop.eup %2810  ;;  %v4275_v38 = vor.u32 1.1754944e-38, %v1013_v42  ;;  %v1028_v11 = vand.u32 2147483648, %v4202_v41 }
 0x156   : >> { %v4278_v27 = vadd.f32 1.0, %v2809_v22  ;;  %v5448_v5 = vpack.c.bf16 %v3297_v48, %v3254_v13  ;;  %v985_v3 = vsel %vm4215_vm14, %v984_v2, %v980_v31  ;;  %v1101_v22 = vand.u32 2147483647, %v4204_v60 }
 0x157   : >> { %v991_v15 = vadd.f32 %v4220_v49, %v990_v33  ;;  %v1103_v16 = vand.u32 2147483648, %v4204_v60  ;;  %v2813_v56 = vpop.eup %2812  ;;  %v1018_v13 = vmul.f32 %v4270_v37, %v4202_v41  ;;  %v1116_v48 = vand.u32 2147483647, %v4236_v14 }
 0x158   : >> { %2144 = vmatpush.bf16.msra.mxu0 %v5448_v5  ;;  %v1118_v9 = vand.u32 2147483648, %v4236_v14  ;;  %2818 = vrcp.f32 %v4278_v27  ;;  %v1005_v62 = vmul.f32 %v4244_v1, %v1004_v32  ;;  %v1026_v2 = vand.u32 2147483647, %v4202_v41 }
 0x159   : >> { %v1093_v31 = vmul.f32 %v2813_v56, %v4204_v60  ;;  %vm1097_vm6 = vweird.f32 %v4204_v60  ;;  %v4306_v5 = vmul.f32 %v985_v3, %v3946_v36  ;;  %v995_v63 = vsel %vm4290_vm5, %v4220_v49, %v991_v15 }
 0x15a   : >> { %v2815_v33 = vpop.eup %2814  ;;  %vm1008_vm7 = vweird.f32 %v4244_v1  ;;  %v4312_v30 = vor.u32 1.1754944e-38, %v1028_v11  ;;  %vm4314_vm8 = vcmp.eq.f32.partialorder %v1011_v44, 8.507059e+37  ;;  %vm4318_vm10 = vcmp.eq.f32.partialorder %v1101_v22, 8.507059e+37 }
 0x15b   : >> { %v2817_v55 = vpop.eup %2816  ;;  %v1094_v34 = vsub.f32 1.0, %v1093_v31  ;;  %v1104_v36 = vor.u32 1.1754944e-38, %v1103_v16  ;;  %vm1112_vm9 = vweird.f32 %v4236_v14  ;;  %v1019_v3 = vsub.f32 1.0, %v1018_v13  ;;  %vm4344_vm15 = vmor %vm1007_vm4, %vm1008_vm7 }
 0x15c   : >> { %vm1023_vm11 = vweird.f32 %v4270_v37  ;;  %v1108_v49 = vmul.f32 %v2817_v55, %v4236_v14  ;;  %vm4325_vm12 = vcmp.eq.f32.partialorder %v1116_v48, 8.507059e+37  ;;  %v1119_v44 = vor.u32 1.1754944e-38, %v1118_v9 }
 0x15d   : >> { %v1000_v15 = vsel %vm4257_vm2, %v999_v17, %v995_v63  ;;  %v1006_v42 = vadd.f32 %v4244_v1, %v1005_v62  ;;  %v1095_v22 = vmul.f32 %v2813_v56, %v1094_v34  ;;  %vm1098_vm13 = vweird.f32 %v2813_v56 }
 0x15e   : >> { %v2819_v16 = vpop.eup %2818  ;;  %vm1022_vm14 = vweird.f32 %v4202_v41  ;;  %v1109_v13 = vsub.f32 1.0, %v1108_v49  ;;  %v4333_v31 = vadd.f32 1.0, %v2815_v33  ;;  %2820 = vpow2.f32 %v4239_v10  ;;  %vm1099_vm2 = vmor %vm1097_vm6, %vm1098_vm13  ;;  %v4363_v49 = vpop.f32.mrf.mxu3 }
 0x15f   : >> { %v2117_v48 = vsel %vm332_vm0, %v2097_v25, 0  ;;  %v1096_v34 = vadd.f32 %v2813_v56, %v1095_v22  ;;  %v1123_v4 = vmul.f32 %v2819_v16, %v4278_v27  ;;  %vm1127_vm1 = vweird.f32 %v4278_v27 }
 0x160   : >> { %v1131_v10 = vand.u32 2147483647, %v4278_v27  ;;  %2154 = vmatpush.bf16.msra.mxu1 %v2117_v48  ;;  %v1020_v52 = vmul.f32 %v4270_v37, %v1019_v3  ;;  %v1110_v25 = vmul.f32 %v2817_v55, %v1109_v13  ;;  %vm1113_vm3 = vweird.f32 %v2817_v55 }
 0x161   : >> { %2822 = vrcp.f32 %v4333_v31  ;;  %v4358_v17 = vmul.f32 %v1000_v15, %v3981_v45  ;;  %v1010_v9 = vsel %vm4344_vm15, %v4244_v1, %v1006_v42  ;;  %v1100_v62 = vsel %vm1099_vm2, %v2813_v56, %v1096_v34  ;;  %vm1114_vm6 = vmor %vm1112_vm9, %vm1113_vm3 }
 0x162   : >> { %v1124_v33 = vsub.f32 1.0, %v1123_v4  ;;  %v1105_v60 = vsel %vm4318_vm10, %v1104_v36, %v1100_v62  ;;  %v1111_v3 = vadd.f32 %v2817_v55, %v1110_v25  ;;  %vm1128_vm4 = vweird.f32 %v2819_v16  ;;  %v4382_v36 = vpop.f32.mrf.mxu0 }
 0x163   : >> { %v1133_v22 = vand.u32 2147483648, %v4278_v27  ;;  %vm4368_vm5 = vcmp.eq.f32.partialorder %v1026_v2, 8.507059e+37  ;;  %v4373_v45 = vmul.f32 %v1105_v60, %v4129_v59  ;;  %2824 = vpow2.f32 %v4242_v8  ;;  %vm1129_vm7 = vmor %vm1127_vm1, %vm1128_vm4  ;;  %v4412_v27 = vpop.f32.mrf.mxu1 }
 0x164   : >> { %v1125_v1 = vmul.f32 %v2819_v16, %v1124_v33  ;;  %v2515_v19 = vmul.f32 -1.442695, %v4355_v43  ;;  %v5461_v56 = vpack.c.bf16 %v4062_v18, %v3976_v7  ;;  %v2821_v2 = vpop.eup %2820  ;;  %v1015_v59 = vsel %vm4314_vm8, %v4275_v38, %v1010_v9  ;;  %vm4406_vm8 = vmor %vm1022_vm14, %vm1023_vm11  ;;  %v4436_v33 = vpop.f32.mrf.mxu2 }
 0x165   : >> { %v1021_v15 = vadd.f32 %v4270_v37, %v1020_v52  ;;  %v1115_v14 = vsel %vm1114_vm6, %v2817_v55, %v1111_v3  ;;  %v2516_v42 = vmul.f32 -1.442695, %v4363_v49  ;;  %v4393_v18 = vadd.f32 1.0, %v2821_v2 }
 0x166   : >> { %2155 = vmatpush.bf16.msra.mxu1 %v5461_v56  ;;  %v1120_v48 = vsel %vm4325_vm12, %v1119_v44, %v1115_v14  ;;  %v1126_v7 = vadd.f32 %v2819_v16, %v1125_v1  ;;  %v1134_v55 = vor.u32 1.1754944e-38, %v1133_v22  ;;  %2826 = vpow2.f32 %v2515_v19 }
 0x167   : >> { %v2823_v63 = vpop.eup %2822  ;;  %v4396_v34 = vmul.f32 %v1120_v48, %v4131_v20  ;;  %v2521_v38 = vmul.f32 -1.442695, %v4382_v36  ;;  %vm1132_vm10 = vcmp.eq.f32.partialorder %v1131_v10, 8.507059e+37  ;;  %2828 = vrcp.f32 %v4393_v18 }
 0x168   : >> { %v1130_v11 = vsel %vm1129_vm7, %v2819_v16, %v1126_v7  ;;  %v1138_v20 = vmul.f32 %v2823_v63, %v4333_v31  ;;  %v5464_v44 = vpack.c.bf16 %v3829_v54, %v3780_v24  ;;  %v4418_v4 = vmul.f32 %v1015_v59, %v4080_v28 }
 0x169   : >> { %v1025_v41 = vsel %vm4406_vm8, %v4270_v37, %v1021_v15  ;;  %v1135_v10 = vsel %vm1132_vm10, %v1134_v55, %v1130_v11  ;;  %v2825_v52 = vpop.eup %2824  ;;  %v1148_v62 = vand.u32 2147483648, %v4333_v31  ;;  %2830 = vpow2.f32 %v2516_v42 }
 0x16a   : >> { %2156 = vmatpush.bf16.msra.mxu1 %v5464_v44  ;;  %5465 = vst [vmem:[#allocation22_spill] sm:$0xff] %v4418_v4  ;;  %v4426_v25 = vmul.f32 %v1135_v10, %v4150_v35  ;;  %v1139_v9 = vsub.f32 1.0, %v1138_v20  ;;  %v4429_v24 = vadd.f32 1.0, %v2825_v52  ;;  %2832 = vpow2.f32 %v2521_v38 }
 0x16b   : >> { %v2522_v54 = vmul.f32 -1.442695, %v4412_v27  ;;  %v5467_v28 = vpack.c.bf16 %v4195_v46, %v4195_v46  ;;  %vm1143_vm9 = vweird.f32 %v2823_v63  ;;  %v1146_v3 = vand.u32 2147483647, %v4333_v31 }
 0x16c   : >> { %5466 = vst [vmem:[#allocation23_spill] sm:$0xff] %v4426_v25  ;;  %v1140_v60 = vmul.f32 %v2823_v63, %v1139_v9  ;;  %v5468_v22 = vpack.c.bf16 %v3581_v23, %v3538_v40  ;;  %v2827_v1 = vpop.eup %2826  ;;  %v1030_v46 = vsel %vm4368_vm5, %v4312_v30, %v1025_v41  ;;  %vm1142_vm11 = vweird.f32 %v4333_v31 }
 0x16d   : >> { %v2120_v37 = vsel %vm332_vm0, %v5467_v28, 0  ;;  %2834 = vrcp.f32 %v4429_v24  ;;  %v4449_v19 = vpop.eup %2828  ;;  %v4451_v2 = vadd.f32 1.0, %v2827_v1  ;;  %v5469_v59 = vpack.c.bf16 %v4249_v58, %v4249_v58  ;;  %vm1144_vm12 = vmor %vm1142_vm11, %vm1143_vm9  ;;  %v5484_v1 = vld [vmem:[#allocation19_spill] sm:$0xff] }
 0x16e   : >> { %2168 = vmatpush.bf16.msra.mxu2 %v2120_v37  ;;  %2157 = vmatpush.bf16.msra.mxu1 %v5468_v22  ;;  %v1141_v56 = vadd.f32 %v2823_v63, %v1140_v60  ;;  %v2523_v23 = vmul.f32 -1.442695, %v4436_v33  ;;  %v1149_v15 = vor.u32 1.1754944e-38, %v1148_v62  ;;  %v1213_v30 = vmul.f32 %v4449_v19, %v4393_v18 }
 0x16f   : >> { %v2123_v40 = vsel %vm332_vm0, %v5469_v59, 0  ;;  %2836 = vpow2.f32 %v2522_v54  ;;  %v2831_v31 = vpop.eup %2830  ;;  %v4461_v13 = vmul.f32 %v1030_v46, %v4086_v53  ;;  %vm1147_vm13 = vcmp.eq.f32.partialorder %v1146_v3, 8.507059e+37  ;;  %v5485_v46 = vld [vmem:[#allocation17_spill] sm:$0xff] }
 0x170   : >> { %2182 = vmatpush.bf16.msra.mxu3 %v2123_v40  ;;  %v1145_v14 = vsel %vm1144_vm12, %v2823_v63, %v1141_v56  ;;  %2838 = vrcp.f32 %v4451_v2  ;;  %v5471_v58 = vpack.c.bf16 %v4074_v29, %v3984_v47  ;;  %v5472_v42 = vpack.c.bf16 %v3328_v26, %v3312_v12  ;;  %v2833_v48 = vpop.eup %2832 }
 0x171   : >> { %5470 = vst [vmem:[#allocation24_spill] sm:$0xff] %v4461_v13  ;;  %v1150_v7 = vsel %vm1147_vm13, %v1149_v15, %v1145_v14  ;;  %v1214_v55 = vsub.f32 1.0, %v1213_v30  ;;  %vm1217_vm14 = vweird.f32 %v4393_v18  ;;  %v4471_v38 = vadd.f32 1.0, %v2831_v31  ;;  %v4536_v30 = vpop.f32.mrf.mxu3 }
 0x172   : >> { %2169 = vmatpush.bf16.msra.mxu2 %v5471_v58  ;;  %2158 = vmatpush.bf16.msra.mxu1 %v5472_v42  ;;  %v4474_v53 = vmul.f32 %v1150_v7, %v4198_v39  ;;  %v1221_v63 = vand.u32 2147483647, %v4393_v18  ;;  %v4477_v32 = vadd.f32 1.0, %v2833_v48  ;;  %2840 = vpow2.f32 %v2523_v23  ;;  %v4553_v48 = vpop.f32.mrf.mxu0 }
 0x173   : >> { %v4479_v47 = vpop.eup %2834  ;;  %v1215_v12 = vmul.f32 %v4449_v19, %v1214_v55  ;;  %vm1218_vm15 = vweird.f32 %v4449_v19  ;;  %v1223_v26 = vand.u32 2147483648, %v4393_v18  ;;  %2842 = vrcp.f32 %v4471_v38 }
 0x174   : >> { %5473 = vst [vmem:[#allocation25_spill] sm:$0xff] %v4474_v53  ;;  %v5474_v29 = vpack.c.bf16 %v4096_v61, %v4008_v0  ;;  %v1228_v11 = vmul.f32 %v4479_v47, %v4429_v24  ;;  %v1236_v20 = vand.u32 2147483647, %v4429_v24  ;;  %v1238_v44 = vand.u32 2147483648, %v4429_v24  ;;  %vm4503_vm1 = vmor %vm1217_vm14, %vm1218_vm15 }
 0x175   : >> { %v5475_v41 = vpack.c.bf16 %v3856_v51, %v3783_v50  ;;  %v2837_v10 = vpop.eup %2836  ;;  %v1216_v52 = vadd.f32 %v4449_v19, %v1215_v12  ;;  %2844 = vrcp.f32 %v4477_v32  ;;  %v1253_v62 = vand.u32 2147483648, %v4451_v2  ;;  %v5480_v51 = vld [vmem:[#allocation21_spill] sm:$0xff]  ;;  %v5489_v12 = vld [vmem:[#allocation20_spill] sm:$0xff] }
 0x176   : >> { %2183 = vmatpush.bf16.msra.mxu3 %v5474_v29  ;;  %v4499_v0 = vpop.eup %2838  ;;  %v1229_v9 = vsub.f32 1.0, %v1228_v11  ;;  %vm4508_vm2 = vcmp.eq.f32.partialorder %v1221_v63, 8.507059e+37  ;;  %vm1232_vm3 = vweird.f32 %v4429_v24  ;;  %vm1233_vm4 = vweird.f32 %v4479_v47 }
 0x177   : >> { %2170 = vmatpush.bf16.msra.mxu2 %v5475_v41  ;;  %v1243_v50 = vmul.f32 %v4499_v0, %v4451_v2  ;;  %v5481_v18 = vpack.c.bf16 %v3860_v21, %v5480_v51  ;;  %v1224_v37 = vor.u32 1.1754944e-38, %v1223_v26  ;;  %vm4520_vm5 = vcmp.eq.f32.partialorder %v1236_v20, 8.507059e+37  ;;  %vm4543_vm7 = vmor %vm1232_vm3, %vm1233_vm4  ;;  %v5490_v26 = vld [vmem:[#allocation18_spill] sm:$0xff] }
 0x178   : >> { %v2841_v28 = vpop.eup %2840  ;;  %v1230_v60 = vmul.f32 %v4479_v47, %v1229_v9  ;;  %v1239_v22 = vor.u32 1.1754944e-38, %v1238_v44  ;;  %v5486_v56 = vpack.c.bf16 %v5484_v1, %v5485_v46  ;;  %v1220_v21 = vsel %vm4503_vm1, %v4449_v19, %v1216_v52  ;;  %v5493_v52 = vld [vmem:[#allocation13_spill] sm:$0xff]  ;;  %v5497_v1 = vld [vmem:[#allocation16_spill] sm:$0xff]  ;;  %v5498_v46 = vld [vmem:[#allocation15_spill] sm:$0xff] }
 0x179   : >> { %v4527_v59 = vpop.eup %2842  ;;  %v1244_v40 = vsub.f32 1.0, %v1243_v50  ;;  %vm1247_vm6 = vweird.f32 %v4451_v2  ;;  %v1251_v23 = vand.u32 2147483647, %v4451_v2  ;;  %v4534_v15 = vadd.f32 1.0, %v2837_v10  ;;  %v5492_v10 = vld [vmem:[#allocation14_spill] sm:$0xff]  ;;  %v4575_v50 = vpop.f32.mrf.mxu1 }
 0x17a   : >> { %2184 = vmatpush.bf16.msra.mxu3 %v5481_v18  ;;  %v1231_v31 = vadd.f32 %v4479_v47, %v1230_v60  ;;  %v4547_v19 = vor.u32 1.1754944e-38, %v1253_v62  ;;  %v1258_v58 = vmul.f32 %v4527_v59, %v4471_v38  ;;  %v4551_v42 = vadd.f32 1.0, %v2841_v28 }
 0x17b   : >> { %2171 = vmatpush.bf16.msra.mxu2 %v5486_v56  ;;  %v2845_v7 = vpop.eup %2844  ;;  %v1245_v55 = vmul.f32 %v4499_v0, %v1244_v40  ;;  %v1341_v63 = vand.u32 2147483647, %v4477_v32  ;;  %v1343_v24 = vand.u32 2147483648, %v4477_v32  ;;  %2846 = vrcp.f32 %v4534_v15 }
 0x17c   : >> { %v5491_v29 = vpack.c.bf16 %v5489_v12, %v5490_v26  ;;  %v1225_v11 = vsel %vm4508_vm2, %v1224_v37, %v1220_v21  ;;  %v1266_v20 = vand.u32 2147483647, %v4471_v38  ;;  %v1268_v44 = vand.u32 2147483648, %v4471_v38 }
 0x17d   : >> { %v1333_v41 = vmul.f32 %v2845_v7, %v4477_v32  ;;  %v5494_v61 = vpack.c.bf16 %v5492_v10, %v5493_v52  ;;  %v1235_v9 = vsel %vm4543_vm7, %v4479_v47, %v1231_v31  ;;  %v1259_v62 = vsub.f32 1.0, %v1258_v58 }
 0x17e   : >> { %2185 = vmatpush.bf16.msra.mxu3 %v5491_v29  ;;  %vm1337_vm8 = vweird.f32 %v4477_v32  ;;  %v2524_v54 = vmul.f32 -1.442695, %v4536_v30  ;;  %vm1248_vm10 = vweird.f32 %v4499_v0  ;;  %v1356_v18 = vand.u32 2147483647, %v4534_v15  ;;  %v4631_v29 = vpop.f32.mrf.mxu3 }
 0x17f   : >> { %2172 = vmatpush.bf16.msra.mxu2 %v5494_v61  ;;  %v1334_v51 = vsub.f32 1.0, %v1333_v41  ;;  %2848 = vrcp.f32 %v4551_v42  ;;  %v4581_v28 = vmul.f32 %v1225_v11, %v4206_v57  ;;  %v4584_v37 = vadd.f32 %v4499_v0, %v1245_v55  ;;  %v4599_v55 = vpop.f32.mrf.mxu2  ;;  %vm4605_vm13 = vmor %vm1247_vm6, %vm1248_vm10  ;;  %v4634_v61 = vpop.f32.mrf.mxu0 }
 0x180   : >> { %vm4586_vm9 = vcmp.eq.f32.partialorder %v1341_v63, 8.507059e+37  ;;  %v1344_v60 = vor.u32 1.1754944e-38, %v1343_v24  ;;  %v5499_v56 = vpack.c.bf16 %v5497_v1, %v5498_v46  ;;  %v1240_v21 = vsel %vm4520_vm5, %v1239_v22, %v1235_v9 }
 0x181   : >> { %v1335_v40 = vmul.f32 %v2845_v7, %v1334_v51  ;;  %vm1338_vm11 = vweird.f32 %v2845_v7  ;;  %v1358_v57 = vand.u32 2147483648, %v4534_v15  ;;  %v2847_v31 = vpop.eup %2846  ;;  %v1260_v14 = vmul.f32 %v4527_v59, %v1259_v62  ;;  %v4646_v46 = vpop.f32.mrf.mxu1 }
 0x182   : >> { %2186 = vmatpush.bf16.msra.mxu3 %v5499_v56  ;;  %vm1263_vm12 = vweird.f32 %v4527_v59  ;;  %2850 = vpow2.f32 %v2524_v54  ;;  %v2529_v58 = vmul.f32 -1.442695, %v4553_v48  ;;  %vm4609_vm14 = vcmp.eq.f32.partialorder %v1251_v23, 8.507059e+37  ;;  %vm1339_vm3 = vmor %vm1337_vm8, %vm1338_vm11 }
 0x183   : >> { %vm1262_vm15 = vweird.f32 %v4471_v38  ;;  %v1336_v63 = vadd.f32 %v2845_v7, %v1335_v40  ;;  %v1348_v24 = vmul.f32 %v2847_v31, %v4534_v15  ;;  %vm1352_vm1 = vweird.f32 %v4534_v15 }
 0x184   : >> { %vm4616_vm2 = vcmp.eq.f32.partialorder %v1356_v18, 8.507059e+37  ;;  %v4621_v2 = vmul.f32 %v1240_v21, %v4208_v6  ;;  %v1250_v23 = vsel %vm4605_vm13, %v4499_v0, %v4584_v37  ;;  %2852 = vpow2.f32 %v2529_v58  ;;  %vm4665_vm8 = vmor %vm1262_vm15, %vm1263_vm12 }
 0x185   : >> { %v2530_v26 = vmul.f32 -1.442695, %v4575_v50  ;;  %v2849_v11 = vpop.eup %2848  ;;  %v1340_v41 = vsel %vm1339_vm3, %v2845_v7, %v1336_v63  ;;  %v1349_v10 = vsub.f32 1.0, %v1348_v24  ;;  %v1359_v52 = vor.u32 1.1754944e-38, %v1358_v57 }
 0x186   : >> { %v2531_v6 = vmul.f32 -1.442695, %v4599_v55  ;;  %v1261_v9 = vadd.f32 %v4527_v59, %v1260_v14  ;;  %v1345_v0 = vsel %vm4586_vm9, %v1344_v60, %v1340_v41  ;;  %v1363_v32 = vmul.f32 %v2849_v11, %v4551_v42 }
 0x187   : >> { %2854 = vpow2.f32 %v2530_v26  ;;  %v4641_v62 = vmul.f32 %v1345_v0, %v4382_v36  ;;  %v1350_v54 = vmul.f32 %v2847_v31, %v1349_v10  ;;  %vm1353_vm4 = vweird.f32 %v2847_v31 }
 0x188   : >> { %v2532_v7 = vmul.f32 -1.442695, %v4631_v29  ;;  %v2851_v51 = vpop.eup %2850  ;;  %v1364_v18 = vsub.f32 1.0, %v1363_v32  ;;  %v1373_v37 = vand.u32 2147483648, %v4551_v42  ;;  %2856 = vpow2.f32 %v2531_v6  ;;  %vm1354_vm5 = vmor %vm1352_vm1, %vm1353_vm4 }
 0x189   : >> { %v2537_v1 = vmul.f32 -1.442695, %v4634_v61  ;;  %v1351_v60 = vadd.f32 %v2847_v31, %v1350_v54  ;;  %v4650_v56 = vadd.f32 1.0, %v2851_v51  ;;  %vm1368_vm6 = vweird.f32 %v2849_v11  ;;  %v4711_v51 = vpop.f32.mrf.mxu0 }
 0x18a   : >> { %2858 = vpow2.f32 %v2532_v7  ;;  %v2853_v36 = vpop.eup %2852  ;;  %v1365_v21 = vmul.f32 %v2849_v11, %v1364_v18  ;;  %v1371_v40 = vand.u32 2147483647, %v4551_v42  ;;  %vm1367_vm7 = vweird.f32 %v4551_v42  ;;  %v4705_v7 = vpop.f32.mrf.mxu3 }
 0x18b   : >> { %2860 = vpow2.f32 %v2537_v1  ;;  %v1355_v57 = vsel %vm1354_vm5, %v2847_v31, %v1351_v60  ;;  %v2538_v14 = vmul.f32 -1.442695, %v4646_v46  ;;  %v1255_v3 = vsel %vm4609_vm14, %v4547_v19, %v1250_v23  ;;  %vm1369_vm10 = vmor %vm1367_vm7, %vm1368_vm6 }
 0x18c   : >> { %2862 = vrcp.f32 %v4650_v56  ;;  %v1360_v42 = vsel %vm4616_vm2, %v1359_v52, %v1355_v57  ;;  %v1366_v31 = vadd.f32 %v2849_v11, %v1365_v21  ;;  %v4671_v63 = vadd.f32 1.0, %v2853_v36  ;;  %v4722_v21 = vpop.f32.mrf.mxu1 }
 0x18d   : >> { %v2855_v58 = vpop.eup %2854  ;;  %v1265_v24 = vsel %vm4665_vm8, %v4527_v59, %v1261_v9  ;;  %v4677_v19 = vmul.f32 %v1360_v42, %v4412_v27  ;;  %v1374_v22 = vor.u32 1.1754944e-38, %v1373_v37  ;;  %v1269_v12 = vor.u32 1.1754944e-38, %v1268_v44 }
 0x18e   : >> { %v4680_v23 = vadd.f32 1.0, %v2855_v58  ;;  %v2857_v26 = vpop.eup %2856  ;;  %v1370_v41 = vsel %vm1369_vm10, %v2849_v11, %v1366_v31  ;;  %vm1372_vm9 = vcmp.eq.f32.partialorder %v1371_v40, 8.507059e+37  ;;  %2864 = vrcp.f32 %v4671_v63 }
 0x18f   : >> { %vm1267_vm11 = vcmp.eq.f32.partialorder %v1266_v20, 8.507059e+37  ;;  %v1375_v59 = vsel %vm1372_vm9, %v1374_v22, %v1370_v41  ;;  %2866 = vpow2.f32 %v2538_v14  ;;  %v4690_v6 = vmul.f32 %v1255_v3, %v4355_v43  ;;  %v4699_v20 = vpop.f32.mrf.mxu2 }
 0x190   : >> { %v2859_v10 = vpop.eup %2858  ;;  %v1270_v9 = vsel %vm1267_vm11, %v1269_v12, %v1265_v24  ;;  %v4693_v44 = vmul.f32 %v1375_v59, %v4436_v33  ;;  %2868 = vrcp.f32 %v4680_v23  ;;  %v1386_v0 = vand.u32 2147483647, %v4650_v56 }
 0x191   : >> { %v2861_v52 = vpop.eup %2860  ;;  %v4697_v38 = vadd.f32 1.0, %v2857_v26  ;;  %v1388_v43 = vand.u32 2147483648, %v4650_v56  ;;  %v4708_v33 = vmul.f32 %v1270_v9, %v4363_v49  ;;  %v4715_v1 = vadd.f32 1.0, %v2859_v10 }
 0x192   : >> { %v2863_v11 = vpop.eup %2862  ;;  %v4717_v60 = vadd.f32 1.0, %v2861_v52  ;;  %v4720_v36 = vmul.f32 -1.442695, %v4699_v20  ;;  %vm1382_vm12 = vweird.f32 %v4650_v56  ;;  %vm4725_vm13 = vcmp.eq.f32.partialorder %v1386_v0, 8.507059e+37 }
 0x193   : >> { %v1378_v54 = vmul.f32 %v2863_v11, %v4650_v56  ;;  %5508 = vst [vmem:[#allocation21_spill] sm:$0xff] %v4708_v33  ;;  %2870 = vrcp.f32 %v4697_v38  ;;  %v4732_v14 = vmul.f32 -1.442695, %v4705_v7  ;;  %vm1383_vm14 = vweird.f32 %v2863_v11 }
 0x194   : >> { %v4713_v18 = vpop.eup %2864  ;;  %v1389_v15 = vor.u32 1.1754944e-38, %v1388_v43  ;;  %2872 = vrcp.f32 %v4715_v1  ;;  %vm1457_vm15 = vweird.f32 %v4671_v63  ;;  %v1461_v31 = vand.u32 2147483647, %v4671_v63  ;;  %vm1384_vm2 = vmor %vm1382_vm12, %vm1383_vm14 }
 0x195   : >> { %v1379_v37 = vsub.f32 1.0, %v1378_v54  ;;  %v2867_v40 = vpop.eup %2866  ;;  %v1453_v57 = vmul.f32 %v4713_v18, %v4671_v63  ;;  %vm1458_vm1 = vweird.f32 %v4713_v18  ;;  %2874 = vrcp.f32 %v4717_v60 }
 0x196   : >> { %v4734_v58 = vpop.eup %2868  ;;  %v4743_v26 = vadd.f32 1.0, %v2867_v40  ;;  %v1463_v10 = vand.u32 2147483648, %v4671_v63  ;;  %v1478_v52 = vand.u32 2147483648, %v4680_v23  ;;  %vm1472_vm3 = vweird.f32 %v4680_v23  ;;  %vm4763_vm4 = vmor %vm1457_vm15, %vm1458_vm1 }
 0x197   : >> { %v1380_v3 = vmul.f32 %v2863_v11, %v1379_v37  ;;  %v1454_v42 = vsub.f32 1.0, %v1453_v57  ;;  %v1468_v24 = vmul.f32 %v4734_v58, %v4680_v23  ;;  %v1476_v0 = vand.u32 2147483647, %v4680_v23  ;;  %v4772_v57 = vpop.f32.mrf.mxu2 }
 0x198   : >> { %vm4767_vm5 = vcmp.eq.f32.partialorder %v1461_v31, 8.507059e+37  ;;  %v1493_v40 = vand.u32 2147483648, %v4697_v38  ;;  %2876 = vrcp.f32 %v4743_v26  ;;  %v1491_v31 = vand.u32 2147483647, %v4697_v38 }
 0x199   : >> { %v1381_v22 = vadd.f32 %v2863_v11, %v1380_v3  ;;  %v4745_v12 = vpop.eup %2870  ;;  %v1455_v41 = vmul.f32 %v4713_v18, %v1454_v42  ;;  %v1469_v59 = vsub.f32 1.0, %v1468_v24  ;;  %v1464_v42 = vor.u32 1.1754944e-38, %v1463_v10 }
 0x19a   : >> { %v1483_v54 = vmul.f32 %v4745_v12, %v4697_v38  ;;  %v4774_v49 = vpop.eup %2872  ;;  %v4781_v24 = vor.u32 1.1754944e-38, %v1478_v52  ;;  %vm1473_vm6 = vweird.f32 %v4734_v58  ;;  %v1581_v10 = vand.u32 2147483647, %v4717_v60  ;;  %v4797_v52 = vpop.f32.mrf.mxu1 }
 0x19b   : >> { %v1385_v9 = vsel %vm1384_vm2, %v2863_v11, %v1381_v22  ;;  %v1456_v56 = vadd.f32 %v4713_v18, %v1455_v41  ;;  %v1498_v22 = vmul.f32 %v4774_v49, %v4715_v1  ;;  %v4786_v41 = vpop.f32.mrf.mxu3  ;;  %v2875_v39 = vpop.eup %2874  ;;  %vm4799_vm7 = vcmp.eq.f32.partialorder %v1476_v0, 8.507059e+37  ;;  %vm4816_vm10 = vmor %vm1472_vm3, %vm1473_vm6 }
 0x19c   : >> { %v1390_v43 = vsel %vm4725_vm13, %v1389_v15, %v1385_v9  ;;  %v1470_v15 = vmul.f32 %v4734_v58, %v1469_v59  ;;  %v1484_v63 = vsub.f32 1.0, %v1483_v54  ;;  %v4788_v9 = vpop.f32.mrf.mxu0  ;;  %v1583_v32 = vand.u32 2147483648, %v4717_v60 }
 0x19d   : >> { %v4777_v3 = vmul.f32 %v1390_v43, %v4536_v30  ;;  %v1460_v59 = vsel %vm4763_vm4, %v4713_v18, %v1456_v56  ;;  %v4803_v43 = vor.u32 1.1754944e-38, %v1493_v40  ;;  %v1573_v30 = vmul.f32 %v2875_v39, %v4717_v60 }
 0x19e   : >> { %v1471_v18 = vadd.f32 %v4734_v58, %v1470_v15  ;;  %v1485_v56 = vmul.f32 %v4745_v12, %v1484_v63  ;;  %vm1487_vm8 = vweird.f32 %v4697_v38  ;;  %v1499_v37 = vsub.f32 1.0, %v1498_v22  ;;  %v2877_v15 = vpop.eup %2876 }
 0x19f   : >> { %v1508_v0 = vand.u32 2147483648, %v4715_v1  ;;  %v1465_v16 = vsel %vm4767_vm5, %v1464_v42, %v1460_v59  ;;  %vm1488_vm9 = vweird.f32 %v4745_v12  ;;  %v1574_v8 = vsub.f32 1.0, %v1573_v30 }
 0x1a0   : >> { %vm1577_vm11 = vweird.f32 %v4717_v60  ;;  %vm1502_vm12 = vweird.f32 %v4715_v1  ;;  %vm1503_vm13 = vweird.f32 %v4774_v49  ;;  %vm4824_vm14 = vcmp.eq.f32.partialorder %v1581_v10, 8.507059e+37  ;;  %vm4863_vm4 = vmor %vm1487_vm8, %vm1488_vm9 }
 0x1a1   : >> { %2878 = vpow2.f32 %v4720_v36  ;;  %v2545_v23 = vmul.f32 -1.442695, %v4711_v51  ;;  %v1575_v11 = vmul.f32 %v2875_v39, %v1574_v8  ;;  %vm1578_vm15 = vweird.f32 %v2875_v39  ;;  %v4841_v8 = vpop.f32.mrf.mxu2  ;;  %vm4883_vm6 = vmor %vm1502_vm12, %vm1503_vm13 }
 0x1a2   : >> { %v1584_v42 = vor.u32 1.1754944e-38, %v1583_v32  ;;  %v1588_v22 = vmul.f32 %v2877_v15, %v4743_v26  ;;  %v4832_v30 = vmul.f32 %v1465_v16, %v4553_v48  ;;  %v1475_v59 = vsel %vm4816_vm10, %v4734_v58, %v1471_v18  ;;  %vm1579_vm1 = vmor %vm1577_vm11, %vm1578_vm15 }
 0x1a3   : >> { %v1486_v10 = vadd.f32 %v4745_v12, %v1485_v56  ;;  %v1500_v27 = vmul.f32 %v4774_v49, %v1499_v37  ;;  %v1576_v47 = vadd.f32 %v2875_v39, %v1575_v11  ;;  %v1596_v35 = vand.u32 2147483647, %v4743_v26  ;;  %v4849_v37 = vpop.f32.mrf.mxu3 }
 0x1a4   : >> { %v1589_v36 = vsub.f32 1.0, %v1588_v22  ;;  %2880 = vpow2.f32 %v4732_v14  ;;  %v1598_v16 = vand.u32 2147483648, %v4743_v26  ;;  %v2546_v48 = vmul.f32 -1.442695, %v4722_v21  ;;  %v4851_v14 = vpop.f32.mrf.mxu0 }
 0x1a5   : >> { %2882 = vpow2.f32 %v2545_v23  ;;  %v2547_v32 = vmul.f32 -1.442695, %v4772_v57  ;;  %v1580_v58 = vsel %vm1579_vm1, %v2875_v39, %v1576_v47  ;;  %vm1593_vm2 = vweird.f32 %v2877_v15  ;;  %v4857_v23 = vpop.f32.mrf.mxu1 }
 0x1a6   : >> { %v1590_v18 = vmul.f32 %v2877_v15, %v1589_v36  ;;  %v2548_v56 = vmul.f32 -1.442695, %v4786_v41  ;;  %v1501_v60 = vadd.f32 %v4774_v49, %v1500_v27  ;;  %v1585_v11 = vsel %vm4824_vm14, %v1584_v42, %v1580_v58 }
 0x1a7   : >> { %v2879_v40 = vpop.eup %2878  ;;  %vm1592_vm3 = vweird.f32 %v4743_v26  ;;  %2884 = vpow2.f32 %v2546_v48  ;;  %v4868_v47 = vmul.f32 %v1585_v11, %v4634_v61  ;;  %v1480_v26 = vsel %vm4799_vm7, %v4781_v24, %v1475_v59 }
 0x1a8   : >> { %v1591_v27 = vadd.f32 %v2877_v15, %v1590_v18  ;;  %v4870_v22 = vadd.f32 1.0, %v2879_v40  ;;  %2886 = vpow2.f32 %v2547_v32  ;;  %v1490_v63 = vsel %vm4863_vm4, %v4745_v12, %v1486_v10  ;;  %vm1594_vm5 = vmor %vm1592_vm3, %vm1593_vm2 }
 0x1a9   : >> { %v1599_v42 = vor.u32 1.1754944e-38, %v1598_v16  ;;  %2888 = vpow2.f32 %v2548_v56  ;;  %vm1597_vm7 = vcmp.eq.f32.partialorder %v1596_v35, 8.507059e+37  ;;  %v1505_v59 = vsel %vm4883_vm6, %v4774_v49, %v1501_v60 }
 0x1aa   : >> { %v2881_v36 = vpop.eup %2880  ;;  %v1595_v54 = vsel %vm1594_vm5, %v2877_v15, %v1591_v27  ;;  %2890 = vrcp.f32 %v4870_v22  ;;  %v2553_v48 = vmul.f32 -1.442695, %v4788_v9  ;;  %v4897_v32 = vmul.f32 %v1480_v26, %v4575_v50 }
 0x1ab   : >> { %v2883_v12 = vpop.eup %2882  ;;  %v1600_v10 = vsel %vm1597_vm7, %v1599_v42, %v1595_v54  ;;  %v4893_v16 = vadd.f32 1.0, %v2881_v36  ;;  %v1509_v58 = vor.u32 1.1754944e-38, %v1508_v0  ;;  %vm1492_vm8 = vcmp.eq.f32.partialorder %v1491_v31, 8.507059e+37  ;;  %v4921_v27 = vpop.f32.mrf.mxu3 }
 0x1ac   : >> { %v4902_v35 = vmul.f32 %v1600_v10, %v4646_v46  ;;  %v4904_v15 = vadd.f32 1.0, %v2883_v12  ;;  %v5525_v49 = vand.u32 2147483647, %v4715_v1  ;;  %v1495_v50 = vsel %vm1492_vm8, %v4803_v43, %v1490_v63  ;;  %v4915_v46 = vpop.f32.mrf.mxu2  ;;  %v523_v60 = vpop.f32.mrf.mxu0 }
 0x1ad   : >> { %v2885_v18 = vpop.eup %2884  ;;  %2892 = vrcp.f32 %v4893_v16  ;;  %v556_v1 = vpop.f32.mrf.mxu1  ;;  %v4924_v43 = vmul.f32 %v1495_v50, %v4599_v55  ;;  %v1611_v42 = vand.u32 2147483647, %v4870_v22  ;;  %v1613_v36 = vand.u32 2147483648, %v4870_v22 }
 0x1ae   : >> { %vm1507_vm10 = vcmp.eq.f32.partialorder %v5525_v49, 8.507059e+37  ;;  %v2887_v56 = vpop.eup %2886  ;;  %2894 = vrcp.f32 %v4904_v15  ;;  %v4917_v38 = vadd.f32 1.0, %v2885_v18  ;;  %v2554_v61 = vmul.f32 -1.442695, %v4797_v52 }
 0x1af   : >> { %v1510_v40 = vsel %vm1507_vm10, %v1509_v58, %v1505_v59  ;;  %v2889_v11 = vpop.eup %2888  ;;  %2896 = vpow2.f32 %v2553_v48  ;;  %v4919_v39 = vadd.f32 1.0, %v2887_v56  ;;  %v4938_v55 = vmul.f32 -1.442695, %v4841_v8 }
 0x1b0   : >> { %v2891_v31 = vpop.eup %2890  ;;  %v4927_v26 = vmul.f32 %v1510_v40, %v4631_v29  ;;  %2898 = vrcp.f32 %v4917_v38  ;;  %v4935_v59 = vadd.f32 1.0, %v2889_v11  ;;  %vm1607_vm9 = vweird.f32 %v4870_v22 }
 0x1b1   : >> { %v1603_v63 = vmul.f32 %v2891_v31, %v4870_v22  ;;  %2900 = vrcp.f32 %v4919_v39  ;;  %v4945_v48 = vmul.f32 -1.442695, %v4849_v37  ;;  %v4948_v58 = vmul.f32 -1.442695, %v4851_v14 }
 0x1b2   : >> { %vm1608_vm11 = vweird.f32 %v2891_v31  ;;  %v4953_v50 = vmul.f32 -1.442695, %v4857_v23  ;;  %vm4955_vm12 = vcmp.eq.f32.partialorder %v1611_v42, 8.507059e+37  ;;  %v1614_v60 = vor.u32 1.1754944e-38, %v1613_v36 }
 0x1b3   : >> { %v2893_v54 = vpop.eup %2892  ;;  %v1604_v12 = vsub.f32 1.0, %v1603_v63  ;;  %v1626_v1 = vand.u32 2147483647, %v4893_v16  ;;  %v1628_v24 = vand.u32 2147483648, %v4893_v16  ;;  %2902 = vrcp.f32 %v4935_v59  ;;  %vm1609_vm13 = vmor %vm1607_vm9, %vm1608_vm11  ;;  %v622_v36 = vpop.f32.mrf.mxu3 }
 0x1b4   : >> { %v4940_v29 = vpop.eup %2894  ;;  %v1618_v10 = vmul.f32 %v2893_v54, %v4893_v16  ;;  %v589_v63 = vpop.f32.mrf.mxu2  ;;  %vm1623_vm14 = vweird.f32 %v2893_v54  ;;  %2904 = vpow2.f32 %v2554_v61  ;;  %vm1622_vm15 = vweird.f32 %v4893_v16 }
 0x1b5   : >> { %v2897_v18 = vpop.eup %2896  ;;  %v1605_v49 = vmul.f32 %v2891_v31, %v1604_v12  ;;  %v1693_v56 = vmul.f32 %v4940_v29, %v4904_v15  ;;  %vm1697_vm1 = vweird.f32 %v4904_v15  ;;  %vm1624_vm2 = vmor %vm1622_vm15, %vm1623_vm14  ;;  %vm1627_vm3 = vcmp.eq.f32.partialorder %v1626_v1, 8.507059e+37 }
 0x1b6   : >> { %v1619_v11 = vsub.f32 1.0, %v1618_v10  ;;  %v4962_v13 = vpop.eup %2898  ;;  %v4966_v53 = vadd.f32 1.0, %v2897_v18  ;;  %vm1698_vm4 = vweird.f32 %v4940_v29  ;;  %vm1712_vm5 = vweird.f32 %v4917_v38 }
 0x1b7   : >> { %v1606_v0 = vadd.f32 %v2891_v31, %v1605_v49  ;;  %v1694_v12 = vsub.f32 1.0, %v1693_v56  ;;  %v4968_v10 = vpop.eup %2900  ;;  %v1708_v49 = vmul.f32 %v4962_v13, %v4917_v38  ;;  %v1716_v1 = vand.u32 2147483647, %v4917_v38  ;;  %vm5006_vm7 = vmor %vm1697_vm1, %vm1698_vm4 }
 0x1b8   : >> { %v1620_v42 = vmul.f32 %v2893_v54, %v1619_v11  ;;  %v1701_v11 = vand.u32 2147483647, %v4904_v15  ;;  %v1723_v61 = vmul.f32 %v4968_v10, %v4919_v39  ;;  %2906 = vrcp.f32 %v4966_v53 }
 0x1b9   : >> { %v1610_v63 = vsel %vm1609_vm13, %v2891_v31, %v1606_v0  ;;  %v1629_v0 = vor.u32 1.1754944e-38, %v1628_v24  ;;  %v1695_v16 = vmul.f32 %v4940_v29, %v1694_v12  ;;  %v1709_v31 = vsub.f32 1.0, %v1708_v49  ;;  %v4985_v40 = vpop.eup %2902 }
 0x1ba   : >> { %v1615_v22 = vsel %vm4955_vm12, %v1614_v60, %v1610_v63  ;;  %v1621_v56 = vadd.f32 %v2893_v54, %v1620_v42  ;;  %v1724_v63 = vsub.f32 1.0, %v1723_v61  ;;  %vm1713_vm6 = vweird.f32 %v4962_v13 }
 0x1bb   : >> { %v4980_v18 = vmul.f32 %v1615_v22, %v4699_v20  ;;  %v1710_v20 = vmul.f32 %v4962_v13, %v1709_v31  ;;  %v2905_v22 = vpop.eup %2904  ;;  %v1696_v12 = vadd.f32 %v4940_v29, %v1695_v16  ;;  %v1718_v49 = vand.u32 2147483648, %v4917_v38  ;;  %vm5024_vm10 = vmor %vm1712_vm5, %vm1713_vm6 }
 0x1bc   : >> { %v1625_v36 = vsel %vm1624_vm2, %v2893_v54, %v1621_v56  ;;  %v1703_v54 = vand.u32 2147483648, %v4904_v15  ;;  %v1731_v56 = vand.u32 2147483647, %v4919_v39  ;;  %vm5010_vm8 = vcmp.eq.f32.partialorder %v1701_v11, 8.507059e+37 }
 0x1bd   : >> { %v1630_v42 = vsel %vm1627_vm3, %v1629_v0, %v1625_v36  ;;  %v1733_v16 = vand.u32 2147483648, %v4919_v39  ;;  %v1738_v31 = vmul.f32 %v4985_v40, %v4935_v59  ;;  %v1711_v36 = vadd.f32 %v4962_v13, %v1710_v20 }
 0x1be   : >> { %v4991_v24 = vmul.f32 %v1630_v42, %v4705_v7  ;;  %v1725_v42 = vmul.f32 %v4968_v10, %v1724_v63  ;;  %v5019_v61 = vadd.f32 1.0, %v2905_v22  ;;  %2908 = vpow2.f32 %v4938_v55  ;;  %v2907_v15 = vpop.eup %2906 }
 0x1bf   : >> { %v1704_v60 = vor.u32 1.1754944e-38, %v1703_v54  ;;  %vm5028_vm9 = vcmp.eq.f32.partialorder %v1716_v1, 8.507059e+37  ;;  %vm1727_vm11 = vweird.f32 %v4919_v39  ;;  %v1748_v20 = vand.u32 2147483648, %v4935_v59 }
 0x1c0   : >> { %v1700_v55 = vsel %vm5006_vm7, %v4940_v29, %v1696_v12  ;;  %v1719_v63 = vor.u32 1.1754944e-38, %v1718_v49  ;;  %vm5037_vm12 = vcmp.eq.f32.partialorder %v1731_v56, 8.507059e+37  ;;  %v1813_v38 = vmul.f32 %v2907_v15, %v4966_v53 }
 0x1c1   : >> { %v1734_v54 = vor.u32 1.1754944e-38, %v1733_v16  ;;  %v1739_v1 = vsub.f32 1.0, %v1738_v31  ;;  %v1746_v25 = vand.u32 2147483647, %v4935_v59  ;;  %2910 = vrcp.f32 %v5019_v61 }
 0x1c2   : >> { %v1715_v33 = vsel %vm5024_vm10, %v4962_v13, %v1711_v36  ;;  %v1726_v7 = vadd.f32 %v4968_v10, %v1725_v42  ;;  %vm1728_vm13 = vweird.f32 %v4968_v10  ;;  %v1814_v29 = vsub.f32 1.0, %v1813_v38 }
 0x1c3   : >> { %v1705_v12 = vsel %vm5010_vm8, %v1704_v60, %v1700_v55  ;;  %vm1742_vm14 = vweird.f32 %v4935_v59  ;;  %v5052_v49 = vor.u32 1.1754944e-38, %v1748_v20  ;;  %v1823_v56 = vand.u32 2147483648, %v4966_v53  ;;  %vm5062_vm2 = vmor %vm1727_vm11, %vm1728_vm13 }
 0x1c4   : >> { %2912 = vpow2.f32 %v4945_v48  ;;  %v2909_v16 = vpop.eup %2908  ;;  %v1815_v31 = vmul.f32 %v2907_v15, %v1814_v29  ;;  %vm1817_vm15 = vweird.f32 %v4966_v53  ;;  %vm1818_vm1 = vweird.f32 %v2907_v15 }
 0x1c5   : >> { %v1821_v13 = vand.u32 2147483647, %v4966_v53  ;;  %v1720_v36 = vsel %vm5028_vm9, %v1719_v63, %v1715_v33  ;;  %v1740_v0 = vmul.f32 %v4985_v40, %v1739_v1  ;;  %v5067_v42 = vadd.f32 1.0, %v2909_v16  ;;  %vm1819_vm3 = vmor %vm1817_vm15, %vm1818_vm1  ;;  %v5543_v16 = vld [vmem:[#allocation12_spill] sm:$0xff] }
 0x1c6   : >> { %2914 = vpow2.f32 %v4948_v58  ;;  %v1730_v48 = vsel %vm5062_vm2, %v4968_v10, %v1726_v7  ;;  %v1816_v53 = vadd.f32 %v2907_v15, %v1815_v31  ;;  %v2563_v4 = vmul.f32 -1.442695, %v4915_v46 }
 0x1c7   : >> { %2916 = vpow2.f32 %v4953_v50  ;;  %v2911_v33 = vpop.eup %2910  ;;  %v5076_v39 = vmul.f32 %v1705_v12, %v4711_v51  ;;  %v1824_v11 = vor.u32 1.1754944e-38, %v1823_v56  ;;  %v2564_v20 = vmul.f32 -1.442695, %v4921_v27 }
 0x1c8   : >> { %2918 = vrcp.f32 %v5067_v42  ;;  %vm1743_vm4 = vweird.f32 %v4985_v40  ;;  %vm5081_vm5 = vcmp.eq.f32.partialorder %v1746_v25, 8.507059e+37  ;;  %v1820_v10 = vsel %vm1819_vm3, %v2907_v15, %v1816_v53 }
 0x1c9   : >> { %vm1822_vm6 = vcmp.eq.f32.partialorder %v1821_v13, 8.507059e+37  ;;  %v1828_v50 = vmul.f32 %v2911_v33, %v5019_v61  ;;  %v5087_v51 = vmul.f32 %v1720_v36, %v4722_v21  ;;  %v1735_v63 = vsel %vm5037_vm12, %v1734_v54, %v1730_v48  ;;  %v5542_v21 = vld [vmem:[#allocation11_spill] sm:$0xff]  ;;  %vm5107_vm7 = vmor %vm1742_vm14, %vm1743_vm4 }
 0x1ca   : >> { %v2913_v55 = vpop.eup %2912  ;;  %v1741_v38 = vadd.f32 %v4985_v40, %v1740_v0  ;;  %v1825_v1 = vsel %vm1822_vm6, %v1824_v11, %v1820_v10  ;;  %2920 = vpow2.f32 %v2563_v4  ;;  %v1836_v12 = vand.u32 2147483647, %v5019_v61 }
 0x1cb   : >> { %v5093_v7 = vmul.f32 %v1825_v1, %v4788_v9  ;;  %v1829_v25 = vsub.f32 1.0, %v1828_v50  ;;  %v5095_v29 = vadd.f32 1.0, %v2913_v55  ;;  %v1838_v56 = vand.u32 2147483648, %v5019_v61 }
 0x1cc   : >> { %v2915_v15 = vpop.eup %2914  ;;  %2922 = vpow2.f32 %v2564_v20  ;;  %v5101_v22 = vor.u32 %v5543_v16, %v5542_v21  ;;  %vm1833_vm8 = vweird.f32 %v2911_v33  ;;  %v1745_v60 = vsel %vm5107_vm7, %v4985_v40, %v1741_v38 }
 0x1cd   : >> { %v2917_v54 = vpop.eup %2916  ;;  %v2092_v31 = vpack.c.bf16 %v5093_v7, %v5076_v39  ;;  %v1830_v13 = vmul.f32 %v2911_v33, %v1829_v25  ;;  %2924 = vrcp.f32 %v5095_v29  ;;  %vm1832_vm10 = vweird.f32 %v5019_v61 }
 0x1ce   : >> { %v2919_v36 = vpop.eup %2918  ;;  %v5118_v0 = vadd.f32 1.0, %v2915_v15  ;;  %v5120_v59 = vadd.f32 1.0, %v2917_v54  ;;  %v1851_v4 = vand.u32 2147483647, %v5067_v42  ;;  %vm2109_vm9 = vcmask 588800   ;;  %vm5127_vm11 = vmor %vm1832_vm10, %vm1833_vm8 }
 0x1cf   : >> { %v1831_v48 = vadd.f32 %v2911_v33, %v1830_v13  ;;  %v1843_v53 = vmul.f32 %v2919_v36, %v5067_v42  ;;  %v5125_v11 = vmul.f32 %v1735_v63, %v4772_v57  ;;  %v1839_v40 = vor.u32 1.1754944e-38, %v1838_v56  ;;  %2571 = vmatmul.msk.bf16.vlgmr.msra.gmra.mxu2 %vm2109_vm9, %v5101_v22  ;;  %2572 = vmatmul.msk.bf16.vlgmr.msra.gmra.mxu3 %vm2109_vm9, %v5101_v22 }
 0x1d0   : >> { %v1853_v61 = vand.u32 2147483648, %v5067_v42  ;;  %2926 = vrcp.f32 %v5118_v0  ;;  %v2921_v10 = vpop.eup %2920  ;;  %vm1837_vm12 = vcmp.eq.f32.partialorder %v1836_v12, 8.507059e+37  ;;  %v1868_v55 = vand.u32 2147483648, %v5095_v29  ;;  %2569 = vmatmul.msk.bf16.vlgmr.msra.gmra.mxu0 %vm2109_vm9, %v5101_v22  ;;  %2570 = vmatmul.msk.bf16.vlgmr.msra.gmra.mxu1 %vm2109_vm9, %v5101_v22 }
 0x1d1   : >> { %v1835_v57 = vsel %vm5127_vm11, %v2911_v33, %v1831_v48  ;;  %v1844_v50 = vsub.f32 1.0, %v1843_v53  ;;  %v1750_v38 = vsel %vm5081_vm5, %v5052_v49, %v1745_v60  ;;  %vm1847_vm13 = vweird.f32 %v5067_v42 }
 0x1d2   : >> { %v2923_v63 = vpop.eup %2922  ;;  %v1840_v1 = vsel %vm1837_vm12, %v1839_v40, %v1835_v57  ;;  %2928 = vrcp.f32 %v5120_v59  ;;  %vm1848_vm14 = vweird.f32 %v2919_v36  ;;  %vm5152_vm15 = vcmp.eq.f32.partialorder %v1851_v4, 8.507059e+37 }
 0x1d3   : >> { %v2925_v33 = vpop.eup %2924  ;;  %v5150_v25 = vmul.f32 %v1840_v1, %v4797_v52  ;;  %v1845_v15 = vmul.f32 %v2919_v36, %v1844_v50  ;;  %v1854_v56 = vor.u32 1.1754944e-38, %v1853_v61  ;;  %vm1862_vm1 = vweird.f32 %v5095_v29  ;;  %vm1849_vm2 = vmor %vm1847_vm13, %vm1848_vm14 }
 0x1d4   : >> { %v1858_v21 = vmul.f32 %v2925_v33, %v5095_v29  ;;  %v1866_v49 = vand.u32 2147483647, %v5095_v29  ;;  %v1869_v54 = vor.u32 1.1754944e-38, %v1868_v55  ;;  %v5161_v52 = vadd.f32 1.0, %v2921_v10 }
 0x1d5   : >> { %v2093_v58 = vpack.c.bf16 %v5150_v25, %v5087_v51  ;;  %v1846_v16 = vadd.f32 %v2919_v36, %v1845_v15  ;;  %vm1937_vm3 = vweird.f32 %v5118_v0  ;;  %v1941_v60 = vand.u32 2147483647, %v5118_v0 }
 0x1d6   : >> { %v2927_v9 = vpop.eup %2926  ;;  %v1859_v13 = vsub.f32 1.0, %v1858_v21  ;;  %v5167_v48 = vadd.f32 1.0, %v2923_v63  ;;  %v1943_v20 = vand.u32 2147483648, %v5118_v0  ;;  %2930 = vrcp.f32 %v5161_v52 }
 0x1d7   : >> { %v1850_v53 = vsel %vm1849_vm2, %v2919_v36, %v1846_v16  ;;  %v1933_v4 = vmul.f32 %v2927_v9, %v5118_v0  ;;  %vm1863_vm4 = vweird.f32 %v2925_v33  ;;  %vm1952_vm5 = vweird.f32 %v5120_v59 }
 0x1d8   : >> { %v2929_v40 = vpop.eup %2928  ;;  %v1855_v61 = vsel %vm5152_vm15, %v1854_v56, %v1850_v53  ;;  %v1860_v42 = vmul.f32 %v2925_v33, %v1859_v13  ;;  %vm1938_vm6 = vweird.f32 %v2927_v9  ;;  %v1956_v55 = vand.u32 2147483647, %v5120_v59  ;;  %vm1864_vm7 = vmor %vm1862_vm1, %vm1863_vm4 }
 0x1d9   : >> { %v5176_v10 = vmul.f32 %v1855_v61, %v4841_v8  ;;  %v1934_v57 = vsub.f32 1.0, %v1933_v4  ;;  %v1948_v36 = vmul.f32 %v2929_v40, %v5120_v59  ;;  %v1958_v63 = vand.u32 2147483648, %v5120_v59  ;;  %vm5188_vm11 = vmor %vm1937_vm3, %vm1938_vm6 }
 0x1da   : >> { %v1861_v50 = vadd.f32 %v2925_v33, %v1860_v42  ;;  %2932 = vrcp.f32 %v5167_v48  ;;  %vm1953_vm8 = vweird.f32 %v2929_v40  ;;  %vm1867_vm10 = vcmp.eq.f32.partialorder %v1866_v49, 8.507059e+37 }
 0x1db   : >> { %v2094_v1 = vpack.c.bf16 %v5176_v10, %v5125_v11  ;;  %v1935_v15 = vmul.f32 %v2927_v9, %v1934_v57  ;;  %v1949_v8 = vsub.f32 1.0, %v1948_v36  ;;  %v1944_v21 = vor.u32 1.1754944e-38, %v1943_v20  ;;  %vm1954_vm13 = vmor %vm1952_vm5, %vm1953_vm8 }
 0x1dc   : >> { %v1865_v12 = vsel %vm1864_vm7, %v2925_v33, %v1861_v50  ;;  %v2931_v16 = vpop.eup %2930  ;;  %vm1942_vm12 = vcmp.eq.f32.partialorder %v1941_v60, 8.507059e+37  ;;  %v2047_v29 = vmul.f32 %v1750_v38, %v4786_v41  ;;  %v1959_v33 = vor.u32 1.1754944e-38, %v1958_v63 }
 0x1dd   : >> { %v1870_v13 = vsel %vm1867_vm10, %v1869_v54, %v1865_v12  ;;  %v1936_v53 = vadd.f32 %v2927_v9, %v1935_v15  ;;  %v1950_v4 = vmul.f32 %v2929_v40, %v1949_v8  ;;  %v1963_v0 = vmul.f32 %v2931_v16, %v5161_v52 }
 0x1de   : >> { %v2055_v61 = vmul.f32 %v1870_v13, %v4849_v37  ;;  %vm1957_vm14 = vcmp.eq.f32.partialorder %v1956_v55, 8.507059e+37  ;;  %v1973_v36 = vand.u32 2147483648, %v5161_v52  ;;  %vm1968_vm15 = vweird.f32 %v2931_v16 }
 0x1df   : >> { %v1940_v49 = vsel %vm5188_vm11, %v2927_v9, %v1936_v53  ;;  %v1951_v42 = vadd.f32 %v2929_v40, %v1950_v4  ;;  %v1964_v60 = vsub.f32 1.0, %v1963_v0  ;;  %v1971_v63 = vand.u32 2147483647, %v5161_v52 }
 0x1e0   : >> { %v2933_v20 = vpop.eup %2932  ;;  %v2095_v54 = vpack.c.bf16 %v2055_v61, %v2047_v29  ;;  %v1945_v57 = vsel %vm1942_vm12, %v1944_v21, %v1940_v49  ;;  %vm1967_vm1 = vweird.f32 %v5161_v52  ;;  %v1974_v12 = vor.u32 1.1754944e-38, %v1973_v36 }
 0x1e1   : >> { %v2060_v41 = vmul.f32 %v1945_v57, %v4851_v14  ;;  %v1955_v37 = vsel %vm1954_vm13, %v2929_v40, %v1951_v42  ;;  %v1978_v59 = vmul.f32 %v2933_v20, %v5167_v48  ;;  %v1965_v50 = vmul.f32 %v2931_v16, %v1964_v60  ;;  %vm1969_vm2 = vmor %vm1967_vm1, %vm1968_vm15 }
 0x1e2   : >> { %v1960_v38 = vsel %vm1957_vm14, %v1959_v33, %v1955_v37  ;;  %v1986_v56 = vand.u32 2147483647, %v5167_v48  ;;  %v1988_v14 = vand.u32 2147483648, %v5167_v48  ;;  %vm1983_vm3 = vweird.f32 %v2933_v20 }
 0x1e3   : >> { %v2100_v15 = vpack.c.bf16 %v2060_v41, %v2060_v41  ;;  %v2061_v9 = vmul.f32 %v1960_v38, %v4857_v23  ;;  %v1979_v55 = vsub.f32 1.0, %v1978_v59  ;;  %v1966_v8 = vadd.f32 %v2931_v16, %v1965_v50 }
 0x1e4   : >> { %vm1972_vm4 = vcmp.eq.f32.partialorder %v1971_v63, 8.507059e+37  ;;  %vm1982_vm5 = vweird.f32 %v5167_v48  ;;  %v1989_v61 = vor.u32 1.1754944e-38, %v1988_v14  ;;  %vm1987_vm7 = vcmp.eq.f32.partialorder %v1986_v56, 8.507059e+37 }
 0x1e5   : >> { %v2101_v40 = vpack.c.bf16 %v2061_v9, %v2061_v9  ;;  %v1980_v21 = vmul.f32 %v2933_v20, %v1979_v55  ;;  %v2126_v13 = vsel %vm332_vm0, %v2100_v15, 0  ;;  %v1970_v53 = vsel %vm1969_vm2, %v2931_v16, %v1966_v8  ;;  %vm1984_vm6 = vmor %vm1982_vm5, %vm1983_vm3 }
 0x1e6   : >> { %2196 = vmatpush.bf16.msrb.mxu0 %v2126_v13  ;;  %v1975_v4 = vsel %vm1972_vm4, %v1974_v12, %v1970_v53  ;;  %v5552_v42 = vpack.c.bf16 %v4868_v47, %v4832_v30  ;;  %v5553_v39 = vpack.c.bf16 %v4902_v35, %v4897_v32  ;;  %v5555_v30 = vpack.c.bf16 %v4677_v19, %v4621_v2  ;;  %v5564_v19 = vld [vmem:[#allocation22_spill] sm:$0xff] }
 0x1e7   : >> { %v1981_v23 = vadd.f32 %v2933_v20, %v1980_v21  ;;  %v2129_v52 = vsel %vm332_vm0, %v2101_v40, 0  ;;  %v2062_v29 = vmul.f32 %v1975_v4, %v4915_v46  ;;  %v5556_v47 = vpack.c.bf16 %v4980_v18, %v4924_v43 }
 0x1e8   : >> { %2210 = vmatpush.bf16.msrb.mxu1 %v2129_v52  ;;  %v5557_v32 = vpack.c.bf16 %v4373_v45, %v4306_v5  ;;  %v5558_v35 = vpack.c.bf16 %v4991_v24, %v4927_v26  ;;  %v5560_v2 = vpack.c.bf16 %v4693_v44, %v4690_v6  ;;  %v5561_v5 = vld [vmem:[#allocation21_spill] sm:$0xff] }
 0x1e9   : >> { %v1985_v33 = vsel %vm1984_vm6, %v2933_v20, %v1981_v23  ;;  %v2102_v0 = vpack.c.bf16 %v2062_v29, %v2062_v29  ;;  %v5562_v45 = vpack.c.bf16 %v4777_v3, %v5561_v5 }
 0x1ea   : >> { %v1990_v49 = vsel %vm1987_vm7, %v1989_v61, %v1985_v33  ;;  %2197 = vmatpush.bf16.msrb.mxu0 %v2092_v31 }
 0x1eb   : >> { %v2063_v16 = vmul.f32 %v1990_v49, %v4921_v27  ;;  %v2132_v48 = vsel %vm332_vm0, %v2102_v0, 0  ;;  %v5554_v27 = vpack.c.bf16 %v4641_v62, %v4581_v28  ;;  %v5559_v28 = vpack.c.bf16 %v4396_v34, %v4358_v17  ;;  %v5563_v62 = vld [vmem:[#allocation23_spill] sm:$0xff]  ;;  %v5566_v17 = vld [vmem:[#allocation25_spill] sm:$0xff]  ;;  %v5567_v34 = vld [vmem:[#allocation24_spill] sm:$0xff] }
 0x1ec   : >> { %2211 = vmatpush.bf16.msrb.mxu1 %v2093_v58  ;;  %2224 = vmatpush.bf16.msrb.mxu2 %v2132_v48  ;;  %v5565_v43 = vpack.c.bf16 %v5563_v62, %v5564_v19  ;;  %v5568_v26 = vpack.c.bf16 %v5566_v17, %v5567_v34 }
 0x1ed   : >> { %v2103_v46 = vpack.c.bf16 %v2063_v16, %v2063_v16 }
 0x1ee   : >> { %2198 = vmatpush.bf16.msrb.mxu0 %v5552_v42 }
 0x1ef   : >> { %v2135_v20 = vsel %vm332_vm0, %v2103_v46, 0 }
 0x1f0   : >> { %2238 = vmatpush.bf16.msrb.mxu3 %v2135_v20  ;;  %2212 = vmatpush.bf16.msrb.mxu1 %v5553_v39 }
 0x1f1   : >> { %2225 = vmatpush.bf16.msrb.mxu2 %v2094_v1 }
 0x1f2   : >> { %2199 = vmatpush.bf16.msrb.mxu0 %v5554_v27 }
 0x1f4   : >> { %2239 = vmatpush.bf16.msrb.mxu3 %v2095_v54  ;;  %2213 = vmatpush.bf16.msrb.mxu1 %v5555_v30 }
 0x1f5   : >> { %2226 = vmatpush.bf16.msrb.mxu2 %v5556_v47 }
 0x1f6   : >> { %2200 = vmatpush.bf16.msrb.mxu0 %v5557_v32 }
 0x1f8   : >> { %2240 = vmatpush.bf16.msrb.mxu3 %v5558_v35  ;;  %2214 = vmatpush.bf16.msrb.mxu1 %v5559_v28 }
 0x1f9   : >> { %2227 = vmatpush.bf16.msrb.mxu2 %v5560_v2  ;;  %2573 = vmatmul.msk.bf16.vlgmr.msrb.gmra.mxu0 %vm2109_vm9, %v5101_v22 }
 0x1fb   : >> { %2574 = vmatmul.msk.bf16.vlgmr.msrb.gmra.mxu1 %vm2109_vm9, %v5101_v22 }
 0x1fc   : >> { %2241 = vmatpush.bf16.msrb.mxu3 %v5562_v45 }
 0x1fd   : >> { %2228 = vmatpush.bf16.msrb.mxu2 %v5565_v43 }
 0x200   : >> { %2242 = vmatpush.bf16.msrb.mxu3 %v5568_v26  ;;  %2575 = vmatmul.msk.bf16.vlgmr.msrb.gmra.mxu2 %vm2109_vm9, %v5101_v22 }
 0x203   : >> { %2576 = vmatmul.msk.bf16.vlgmr.msrb.gmra.mxu3 %vm2109_vm9, %v5101_v22 }
 0x24d   : >> { %v2146_v6 = vpop.f32.mrf.mxu0  ;;  %v2160_v44 = vpop.f32.mrf.mxu1 }
 0x24e   : >> { %2250 = vst [vmem:[%s5270_s21] sm:$0xff] %v2146_v6 }
 0x24f   : >> { %2579 = vst [vmem:[%s5270_s21 + $0x10] sm:$0xff] %v2160_v44 }
 0x252   : >> { %v2174_v3 = vpop.f32.mrf.mxu2  ;;  %v2188_v18 = vpop.f32.mrf.mxu3 }
 0x253   : >> { %2583 = vst [vmem:[%s5270_s21 + $0x20] sm:$0xff] %v2174_v3 }
 0x254   : >> { %2587 = vst [vmem:[%s5270_s21 + $0x30] sm:$0xff] %v2188_v18 }
 0x255   : >> { %v2148_v24 = vpop.f32.mrf.mxu0  ;;  %v2162_v51 = vpop.f32.mrf.mxu1 }
 0x256   : >> { %2251 = vst [vmem:[%s5270_s21 + $0x8] sm:$0x1] %v2148_v24 }
 0x257   : >> { %2580 = vst [vmem:[%s5270_s21 + $0x18] sm:$0x1] %v2162_v51 }
 0x25a   : >> { %v2176_v7 = vpop.f32.mrf.mxu2  ;;  %v2190_v22 = vpop.f32.mrf.mxu3 }
 0x25b   : >> { %2584 = vst [vmem:[%s5270_s21 + $0x28] sm:$0x1] %v2176_v7 }
 0x25c   : >> { %2588 = vst [vmem:[%s5270_s21 + $0x38] sm:$0x1] %v2190_v22 }
 0x276   : >> { %v2202_v31 = vpop.f32.mrf.mxu0 }
 0x277   : >> { %2591 = vst [vmem:[%s5270_s21 + $0x40] sm:$0xff] %v2202_v31 }
 0x278   : >> { %v2216_v11 = vpop.f32.mrf.mxu1 }
 0x279   : >> { %2595 = vst [vmem:[%s5270_s21 + $0x50] sm:$0xff] %v2216_v11 }
 0x27e   : >> { %v2204_v25 = vpop.f32.mrf.mxu0 }
 0x27f   : >> { %2592 = vst [vmem:[%s5270_s21 + $0x48] sm:$0x1] %v2204_v25 }
 0x280   : >> { %v2218_v58 = vpop.f32.mrf.mxu1 }
 0x281   : >> { %2596 = vst [vmem:[%s5270_s21 + $0x58] sm:$0x1] %v2218_v58 }
 0x283   : >> { %v2230_v10 = vpop.f32.mrf.mxu2 }
 0x284   : >> { %2599 = vst [vmem:[%s5270_s21 + $0x60] sm:$0xff] %v2230_v10 }
 0x286   : >> { %v2244_v1 = vpop.f32.mrf.mxu3 }
 0x287   : >> { %2603 = vst [vmem:[%s5270_s21 + $0x70] sm:$0xff] %v2244_v1 }
 0x28b   : >> { %v2232_v54 = vpop.f32.mrf.mxu2  ;;  %195 = sbr.rel (!%p193_p4) target bundleno = 23 (0x17), region = 85 }
 0x28c   : >> { %2600 = vst [vmem:[%s5270_s21 + $0x68] sm:$0x1] %v2232_v54 }
 0x28e   : >> { %v2246_v57 = vpop.f32.mrf.mxu3 }
 0x28f   : >> { %2604 = vst [vmem:[%s5270_s21 + $0x78] sm:$0x1] %v2246_v57 }
 0x290 PF: > { %s13_s12 = sadd.s32 1, %s2944_s12  }
 0x291   : > { %p10_p5 = scmp.ge.s32.totalorder %s13_s12, 4  }
 0x293   :  { %12 = sbr.rel (!%p10_p5) target bundleno = 1 (0x1), region = 96 }

</bundles_post_ra>
